<compile_context>
chip_gen: v7x
topology: tpu7x:2x2x1
jax: 0.10.0
libtpu: 0.0.40
codegen_flags: <defaults>
</compile_context>

<pallas_src>
import functools

import jax
import jax.numpy as jnp
from jax import lax
from jax.experimental import pallas as pl
from jax.experimental.pallas import tpu as pltpu

_LANE = 128


def _round_up(x, m):
    return (x + m - 1) // m * m


# --------------------------------------------------------------------------
# Portable in-kernel RNG (VPU-only ops: works compiled on TPU and interpreted)
# --------------------------------------------------------------------------
def _hash_u32(x):
    # Low-bias 32-bit integer hash (xor-shift-multiply).
    x = x ^ (x >> jnp.uint32(16))
    x = x * jnp.uint32(0x7FEB352D)
    x = x ^ (x >> jnp.uint32(15))
    x = x * jnp.uint32(0x846CA68B)
    x = x ^ (x >> jnp.uint32(16))
    return x


def _approx_randn(shape, seed_i32, row_base, k=12):
    """Counter-based approx N(0,1): Irwin-Hall(k) of hashed uniforms."""
    rows = lax.broadcasted_iota(jnp.int32, shape, 0) + row_base
    cols = lax.broadcasted_iota(jnp.int32, shape, 1)
    ctr = (rows * shape[1] + cols).astype(jnp.uint32)
    seed_u = seed_i32.astype(jnp.uint32)
    acc = jnp.zeros(shape, jnp.float32)
    for r in range(k):
        salt = (0x9E3779B9 * (r + 1)) & 0xFFFFFFFF
        h = _hash_u32(ctr ^ (seed_u + jnp.uint32(salt)))
        # 24-bit uniform in [0, 1): shift keeps the value signed-int32 safe.
        u = (h >> jnp.uint32(8)).astype(jnp.int32).astype(jnp.float32) * (1.0 / 16777216.0)
        acc = acc + u
    # Irwin-Hall(k): mean k/2, var k/12 -> standardize (exactly 1.0 for k=12).
    return (acc - 0.5 * k) * float((12.0 / k) ** 0.5)


# --------------------------------------------------------------------------
# Kernel: one grid step computes one full b_tile of the batch
# --------------------------------------------------------------------------
def _textmf_kernel(midx_ref, pidx_ref, seed_ref,                    # scalar prefetch (SMEM)
                   p_tab_ref, q_tab_ref, wp_ref, bp_ref, wc_ref, bc_ref,  # inputs (VMEM)
                   out_ref,                                         # output
                   p_tile, q_tile,                                  # VMEM scratch
                   *, alpha, add_noise):
    i = pl.program_id(0)                 # top-level only (interpret-safe)
    b_tile = p_tile.shape[0]
    base = i * b_tile

    # In-kernel gather of b_tile rows from the VMEM-resident tables.
    def _gather(j, carry):
        mi = midx_ref[base + j]
        pi = pidx_ref[base + j]
        p_tile[pl.ds(j, 1), :] = p_tab_ref[pl.ds(mi, 1), :]
        q_tile[pl.ds(j, 1), :] = q_tab_ref[pl.ds(pi, 1), :]
        return carry

    lax.fori_loop(0, b_tile, _gather, 0, unroll=min(8, b_tile))

    q = q_tile[...]
    if add_noise:
        # q += randn_like(q) * alpha (approximate, drawn on-chip, no HBM traffic).
        z = _approx_randn(q.shape, seed_ref[0], base)
        q = q.astype(jnp.float32) + jnp.float32(alpha) * z

    # text_proj: [b_tile, T_pad] @ [T_pad, D_pad] + bias   (f32 accumulation)
    qp = jnp.dot(q.astype(wp_ref.dtype), wp_ref[...],
                 preferred_element_type=jnp.float32,
                 precision=jax.lax.Precision.HIGHEST) + bp_ref[...]
    # elementwise p * text_proj(q) kept in f32 (v5e has no bf16 VPU)
    h = p_tile[...].astype(jnp.float32) * qp
    # classifier: [b_tile, D_pad] @ [D_pad, C_pad] + bias   (lane-dense store)
    logits = jnp.dot(h.astype(wc_ref.dtype), wc_ref[...],
                     preferred_element_type=jnp.float32,
                     precision=jax.lax.Precision.HIGHEST) + bc_ref[...]
    out_ref[...] = logits.astype(out_ref.dtype)


# --------------------------------------------------------------------------
# Parameter prep (transposes / zero-padding / dtype cast — done ONCE)
# --------------------------------------------------------------------------
def prepare_params(params, compute_dtype=jnp.float32):
    P, Q = params["P"], params["Q"]
    Wproj, bproj = params["Wproj"], params["bproj"]
    Wcls, bcls = params["Wcls"], params["bcls"]

    D, T = Wproj.shape            # text_proj: text_dim -> model_embedding_dim
    C = Wcls.shape[0]
    D_pad = _round_up(D, _LANE)
    T_pad = _round_up(T, _LANE)
    C_pad = _round_up(C, _LANE)
    nm, npr = P.shape[0], Q.shape[0]

    # Tables stay f32 (robust dynamic-row indexing); weights may be bf16.
    P_pad = jnp.zeros((nm, D_pad), jnp.float32).at[:, :D].set(P.astype(jnp.float32))
    Q_pad = jnp.zeros((npr, T_pad), jnp.float32).at[:, :T].set(Q.astype(jnp.float32))
    wp_t = jnp.zeros((T_pad, D_pad), compute_dtype).at[:T, :D].set(
        Wproj.T.astype(compute_dtype))                               # [T_pad, D_pad]
    bp = jnp.zeros((1, D_pad), jnp.float32).at[:, :D].set(bproj.reshape(1, D))
    wc_t = jnp.zeros((D_pad, C_pad), compute_dtype).at[:D, :C].set(
        Wcls.T.astype(compute_dtype))                                # [D_pad, C_pad]
    bc = jnp.zeros((1, C_pad), jnp.float32).at[:, :C].set(bcls.reshape(1, C))

    return {"P_pad": P_pad, "Q_pad": Q_pad, "wp_t": wp_t, "bp": bp,
            "wc_t": wc_t, "bc": bc, "num_classes": C}


# --------------------------------------------------------------------------
# Forward
# --------------------------------------------------------------------------
def textmf_forward(prep, model_idx, prompt_idx, *, alpha,
                   test_mode=False, seed=0, b_tile=256):
    P_pad, Q_pad = prep["P_pad"], prep["Q_pad"]
    wp_t, bp, wc_t, bc = prep["wp_t"], prep["bp"], prep["wc_t"], prep["bc"]
    C = prep["num_classes"]

    NM, D_pad = P_pad.shape
    NP, T_pad = Q_pad.shape
    C_pad = wc_t.shape[1]

    B = int(model_idx.shape[0])
    b_tile = max(8, min(int(b_tile), _round_up(B, 8)))          # multiple of 8
    if B > 8 and _round_up(B, b_tile) // b_tile < 2:
        # Ensure >= 2 tiles so both v7x TensorCores get work.
        b_tile = max(8, _round_up((B + 1) // 2, 8))
    B_pad = _round_up(B, b_tile)
    n_tiles = B_pad // b_tile

    midx = jnp.zeros((B_pad,), jnp.int32).at[:B].set(model_idx.astype(jnp.int32))
    pidx = jnp.zeros((B_pad,), jnp.int32).at[:B].set(prompt_idx.astype(jnp.int32))
    seed_arr = jnp.asarray([seed], dtype=jnp.int32)
    # TODO(synk): for very large B, deliver per-tile index chunks (SMEM blocks
    # or manual DMA) instead of scalar-prefetching the whole batch into SMEM.

    kernel = functools.partial(_textmf_kernel, alpha=float(alpha),
                               add_noise=not test_mode)

    grid_spec = pltpu.PrefetchScalarGridSpec(
        num_scalar_prefetch=3,
        grid=(n_tiles,),
        in_specs=[
            # VMEM-resident tables & weights (constant index_maps, full blocks)
            pl.BlockSpec((NM, D_pad), lambda i, m, p, s: (0, 0)),
            pl.BlockSpec((NP, T_pad), lambda i, m, p, s: (0, 0)),
            pl.BlockSpec((T_pad, D_pad), lambda i, m, p, s: (0, 0)),
            pl.BlockSpec((1, D_pad), lambda i, m, p, s: (0, 0)),
            pl.BlockSpec((D_pad, C_pad), lambda i, m, p, s: (0, 0)),
            pl.BlockSpec((1, C_pad), lambda i, m, p, s: (0, 0)),
        ],
        out_specs=pl.BlockSpec((b_tile, C_pad), lambda i, m, p, s: (i, 0)),
        scratch_shapes=[
            pltpu.VMEM((b_tile, D_pad), jnp.float32),   # gathered P rows
            pltpu.VMEM((b_tile, T_pad), jnp.float32),   # gathered Q rows
        ],
    )

    def _nbytes(x):
        return x.size * x.dtype.itemsize

    resident = sum(_nbytes(x) for x in (P_pad, Q_pad, wp_t, bp, wc_t, bc))
    scratch = b_tile * (D_pad + T_pad) * 4
    out_tile = b_tile * C_pad * 4
    vmem_limit = int(min(96 * 1024 * 1024,
                         max(32 * 1024 * 1024,
                             2 * (resident + out_tile) + scratch + 4 * 1024 * 1024)))

    cost = pl.CostEstimate(
        flops=int(2 * B_pad * D_pad * (T_pad + C_pad) + B_pad * D_pad),
        transcendentals=0,
        bytes_accessed=int(resident                      # one-time table/weight reads
                           + 8 * B_pad                   # indices
                           + B_pad * C_pad * 4),         # logits writeback
    )

    logits_pad = pl.pallas_call(
        kernel,
        out_shape=jax.ShapeDtypeStruct((B_pad, C_pad), jnp.float32),
        grid_spec=grid_spec,
        compiler_params=pltpu.CompilerParams(
            dimension_semantics=("parallel",),
            vmem_limit_bytes=vmem_limit),
        cost_estimate=cost,
    )(midx, pidx, seed_arr, P_pad, Q_pad, wp_t, bp, wc_t, bc)

    return logits_pad[:B, :C]


def textmf_predict(prep, model_idx, prompt_idx, *, alpha):
    logits = textmf_forward(prep, model_idx, prompt_idx, alpha=alpha, test_mode=True)
    return jnp.argmax(logits, axis=1)


# --------------------------------------------------------------------------
# Synthetic init + pure-JAX reference
# --------------------------------------------------------------------------
def init_params(key, *, num_models, num_prompts, model_embedding_dim,
                text_dim, num_classes):
    ks = jax.random.split(key, 6)
    P = jax.random.normal(ks[0], (num_models, model_embedding_dim), jnp.float32)
    Q = jax.random.normal(ks[1], (num_prompts, text_dim), jnp.float32)
    Wproj = jax.random.normal(ks[2], (model_embedding_dim, text_dim), jnp.float32) * 0.02
    bproj = jax.random.normal(ks[3], (model_embedding_dim,), jnp.float32) * 0.02
    Wcls = jax.random.normal(ks[4], (num_classes, model_embedding_dim), jnp.float32) * 0.02
    bcls = jax.random.normal(ks[5], (num_classes,), jnp.float32) * 0.02
    return {"P": P, "Q": Q, "Wproj": Wproj, "bproj": bproj,
            "Wcls": Wcls, "bcls": bcls}


def textmf_reference(params, model_idx, prompt_idx):
    hi = jax.lax.Precision.HIGHEST
    p = jnp.take(params["P"], model_idx, axis=0)
    q = jnp.take(params["Q"], prompt_idx, axis=0)
    q = jnp.dot(q, params["Wproj"].T, precision=hi) + params["bproj"]
    return jnp.dot(p * q, params["Wcls"].T, precision=hi) + params["bcls"]


# --------------------------------------------------------------------------
# Demo / self-check
# --------------------------------------------------------------------------
if __name__ == "__main__":
    num_models = 10
    num_prompts = 20
    model_embedding_dim = 64
    text_dim = 256
    num_classes = 2
    batch = 8
    alpha = 0.05

    key = jax.random.PRNGKey(0)
    pkey, ikey1, ikey2, ikey3, ikey4 = jax.random.split(key, 5)

    params = init_params(pkey,
                         num_models=num_models,
                         num_prompts=num_prompts,
                         model_embedding_dim=model_embedding_dim,
                         text_dim=text_dim,
                         num_classes=num_classes)

    model_idx = jax.random.randint(ikey1, (batch,), 0, num_models)
    prompt_idx = jax.random.randint(ikey2, (batch,), 0, num_prompts)
    ref = textmf_reference(params, model_idx, prompt_idx)

    # f32 path (single tile).
    prep_f32 = prepare_params(params, compute_dtype=jnp.float32)
    logits_f32 = jax.block_until_ready(
        textmf_forward(prep_f32, model_idx, prompt_idx, alpha=alpha, test_mode=True))
    assert logits_f32.shape == (batch, num_classes)
    assert jnp.allclose(logits_f32, ref, atol=2e-3, rtol=2e-3), "f32 mismatch vs reference"

    # bf16-weight path (halves weight footprint; f32 accumulation).
    prep_bf16 = prepare_params(params, compute_dtype=jnp.bfloat16)
    logits_bf16 = jax.block_until_ready(
        textmf_forward(prep_bf16, model_idx, prompt_idx, alpha=alpha, test_mode=True))
    assert jnp.allclose(logits_bf16, ref, atol=3e-2, rtol=3e-2), "bf16 mismatch vs reference"

    # Multi-tile path (n_tiles > 1, padded batch rows sliced off).
    batch2 = 20
    midx2 = jax.random.randint(ikey3, (batch2,), 0, num_models)
    pidx2 = jax.random.randint(ikey4, (batch2,), 0, num_prompts)
    ref2 = textmf_reference(params, midx2, pidx2)
    logits_mt = jax.block_until_ready(
        textmf_forward(prep_f32, midx2, pidx2, alpha=alpha, test_mode=True, b_tile=8))
    assert logits_mt.shape == (batch2, num_classes)
    assert jnp.allclose(logits_mt, ref2, atol=2e-3, rtol=2e-3), "multi-tile mismatch"

    # Training-mode path: noise drawn in-kernel (portable counter-based RNG).
    logits_train = jax.block_until_ready(
        textmf_forward(prep_f32, model_idx, prompt_idx, alpha=alpha,
                       test_mode=False, seed=123))
    assert logits_train.shape == (batch, num_classes)
    assert bool(jnp.all(jnp.isfinite(logits_train)))

    preds = jax.block_until_ready(
        textmf_predict(prep_f32, model_idx, prompt_idx, alpha=alpha))
    assert preds.shape == (batch,)

    print("KERNEL_OK")
</pallas_src>

<mosaic_0001>
module attributes {stable_mosaic.version = 11 : i64} {
  func.func @_textmf_kernel(%arg0: i32, %arg1: memref<8xi32, #tpu.memory_space<smem>>, %arg2: memref<8xi32, #tpu.memory_space<smem>>, %arg3: memref<1xi32, #tpu.memory_space<smem>>, %arg4: memref<10x128xf32, #tpu.memory_space<vmem>>, %arg5: memref<20x256xf32, #tpu.memory_space<vmem>>, %arg6: memref<256x128xf32, #tpu.memory_space<vmem>>, %arg7: memref<1x128xf32, #tpu.memory_space<vmem>>, %arg8: memref<128x128xf32, #tpu.memory_space<vmem>>, %arg9: memref<1x128xf32, #tpu.memory_space<vmem>>, %arg10: memref<8x128xf32, #tpu.memory_space<vmem>>, %arg11: memref<8x128xf32, #tpu.memory_space<vmem>>, %arg12: memref<8x256xf32, #tpu.memory_space<vmem>>) attributes {dimension_semantics = [#tpu.dimension_semantics<parallel>], iteration_bounds = array<i64: 1>, scalar_prefetch = 3 : i64, scratch_operands = 2 : i64, tpu.core_type = #tpu.core_type<tc>, window_params = [{pipeline_mode = #tpu.pipeline_mode<synchronous>, transform_indices = @transform_0, window_bounds = array<i64: 10, 128>}, {pipeline_mode = #tpu.pipeline_mode<synchronous>, transform_indices = @transform_1, window_bounds = array<i64: 20, 256>}, {pipeline_mode = #tpu.pipeline_mode<synchronous>, transform_indices = @transform_2, window_bounds = array<i64: 256, 128>}, {pipeline_mode = #tpu.pipeline_mode<synchronous>, transform_indices = @transform_3, window_bounds = array<i64: 1, 128>}, {pipeline_mode = #tpu.pipeline_mode<synchronous>, transform_indices = @transform_4, window_bounds = array<i64: 128, 128>}, {pipeline_mode = #tpu.pipeline_mode<synchronous>, transform_indices = @transform_5, window_bounds = array<i64: 1, 128>}, {transform_indices = @transform_6, window_bounds = array<i64: 8, 128>}]} {
    %c8_i32 = arith.constant 8 : i32
    %0 = arith.muli %arg0, %c8_i32 : i32
    %c0_i32 = arith.constant 0 : i32
    %1 = arith.addi %0, %c0_i32 : i32
    %2 = arith.index_cast %1 : i32 to index
    %3 = memref.load %arg1[%2] : memref<8xi32, #tpu.memory_space<smem>>
    %4 = arith.addi %0, %c0_i32 : i32
    %5 = arith.index_cast %4 : i32 to index
    %6 = memref.load %arg2[%5] : memref<8xi32, #tpu.memory_space<smem>>
    %7 = arith.index_cast %3 : i32 to index
    %c0 = arith.constant 0 : index
    %8 = vector.load %arg4[%7, %c0] : memref<10x128xf32, #tpu.memory_space<vmem>>, vector<1x128xf32>
    %9 = arith.index_cast %c0_i32 : i32 to index
    %c0_0 = arith.constant 0 : index
    %10 = vector.load %arg11[%9, %c0_0] : memref<8x128xf32, #tpu.memory_space<vmem>>, vector<1x128xf32>
    tpu.vector_store %arg11[%9, %c0_0], %8 {strides = array<i32>} : memref<8x128xf32, #tpu.memory_space<vmem>>, vector<1x128xf32>,
    %11 = arith.index_cast %6 : i32 to index
    %c0_1 = arith.constant 0 : index
    %12 = vector.load %arg5[%11, %c0_1] : memref<20x256xf32, #tpu.memory_space<vmem>>, vector<1x256xf32>
    %13 = arith.index_cast %c0_i32 : i32 to index
    %c0_2 = arith.constant 0 : index
    %14 = vector.load %arg12[%13, %c0_2] : memref<8x256xf32, #tpu.memory_space<vmem>>, vector<1x256xf32>
    tpu.vector_store %arg12[%13, %c0_2], %12 {strides = array<i32>} : memref<8x256xf32, #tpu.memory_space<vmem>>, vector<1x256xf32>,
    %c1_i32 = arith.constant 1 : i32
    %15 = arith.addi %0, %c1_i32 : i32
    %16 = arith.index_cast %15 : i32 to index
    %17 = memref.load %arg1[%16] : memref<8xi32, #tpu.memory_space<smem>>
    %18 = arith.addi %0, %c1_i32 : i32
    %19 = arith.index_cast %18 : i32 to index
    %20 = memref.load %arg2[%19] : memref<8xi32, #tpu.memory_space<smem>>
    %21 = arith.index_cast %17 : i32 to index
    %c0_3 = arith.constant 0 : index
    %22 = vector.load %arg4[%21, %c0_3] : memref<10x128xf32, #tpu.memory_space<vmem>>, vector<1x128xf32>
    %23 = arith.index_cast %c1_i32 : i32 to index
    %c0_4 = arith.constant 0 : index
    %24 = vector.load %arg11[%23, %c0_4] : memref<8x128xf32, #tpu.memory_space<vmem>>, vector<1x128xf32>
    tpu.vector_store %arg11[%23, %c0_4], %22 {strides = array<i32>} : memref<8x128xf32, #tpu.memory_space<vmem>>, vector<1x128xf32>,
    %25 = arith.index_cast %20 : i32 to index
    %c0_5 = arith.constant 0 : index
    %26 = vector.load %arg5[%25, %c0_5] : memref<20x256xf32, #tpu.memory_space<vmem>>, vector<1x256xf32>
    %27 = arith.index_cast %c1_i32 : i32 to index
    %c0_6 = arith.constant 0 : index
    %28 = vector.load %arg12[%27, %c0_6] : memref<8x256xf32, #tpu.memory_space<vmem>>, vector<1x256xf32>
    tpu.vector_store %arg12[%27, %c0_6], %26 {strides = array<i32>} : memref<8x256xf32, #tpu.memory_space<vmem>>, vector<1x256xf32>,
    %c2_i32 = arith.constant 2 : i32
    %29 = arith.addi %0, %c2_i32 : i32
    %30 = arith.index_cast %29 : i32 to index
    %31 = memref.load %arg1[%30] : memref<8xi32, #tpu.memory_space<smem>>
    %32 = arith.addi %0, %c2_i32 : i32
    %33 = arith.index_cast %32 : i32 to index
    %34 = memref.load %arg2[%33] : memref<8xi32, #tpu.memory_space<smem>>
    %35 = arith.index_cast %31 : i32 to index
    %c0_7 = arith.constant 0 : index
    %36 = vector.load %arg4[%35, %c0_7] : memref<10x128xf32, #tpu.memory_space<vmem>>, vector<1x128xf32>
    %37 = arith.index_cast %c2_i32 : i32 to index
    %c0_8 = arith.constant 0 : index
    %38 = vector.load %arg11[%37, %c0_8] : memref<8x128xf32, #tpu.memory_space<vmem>>, vector<1x128xf32>
    tpu.vector_store %arg11[%37, %c0_8], %36 {strides = array<i32>} : memref<8x128xf32, #tpu.memory_space<vmem>>, vector<1x128xf32>,
    %39 = arith.index_cast %34 : i32 to index
    %c0_9 = arith.constant 0 : index
    %40 = vector.load %arg5[%39, %c0_9] : memref<20x256xf32, #tpu.memory_space<vmem>>, vector<1x256xf32>
    %41 = arith.index_cast %c2_i32 : i32 to index
    %c0_10 = arith.constant 0 : index
    %42 = vector.load %arg12[%41, %c0_10] : memref<8x256xf32, #tpu.memory_space<vmem>>, vector<1x256xf32>
    tpu.vector_store %arg12[%41, %c0_10], %40 {strides = array<i32>} : memref<8x256xf32, #tpu.memory_space<vmem>>, vector<1x256xf32>,
    %c3_i32 = arith.constant 3 : i32
    %43 = arith.addi %0, %c3_i32 : i32
    %44 = arith.index_cast %43 : i32 to index
    %45 = memref.load %arg1[%44] : memref<8xi32, #tpu.memory_space<smem>>
    %46 = arith.addi %0, %c3_i32 : i32
    %47 = arith.index_cast %46 : i32 to index
    %48 = memref.load %arg2[%47] : memref<8xi32, #tpu.memory_space<smem>>
    %49 = arith.index_cast %45 : i32 to index
    %c0_11 = arith.constant 0 : index
    %50 = vector.load %arg4[%49, %c0_11] : memref<10x128xf32, #tpu.memory_space<vmem>>, vector<1x128xf32>
    %51 = arith.index_cast %c3_i32 : i32 to index
    %c0_12 = arith.constant 0 : index
    %52 = vector.load %arg11[%51, %c0_12] : memref<8x128xf32, #tpu.memory_space<vmem>>, vector<1x128xf32>
    tpu.vector_store %arg11[%51, %c0_12], %50 {strides = array<i32>} : memref<8x128xf32, #tpu.memory_space<vmem>>, vector<1x128xf32>,
    %53 = arith.index_cast %48 : i32 to index
    %c0_13 = arith.constant 0 : index
    %54 = vector.load %arg5[%53, %c0_13] : memref<20x256xf32, #tpu.memory_space<vmem>>, vector<1x256xf32>
    %55 = arith.index_cast %c3_i32 : i32 to index
    %c0_14 = arith.constant 0 : index
    %56 = vector.load %arg12[%55, %c0_14] : memref<8x256xf32, #tpu.memory_space<vmem>>, vector<1x256xf32>
    tpu.vector_store %arg12[%55, %c0_14], %54 {strides = array<i32>} : memref<8x256xf32, #tpu.memory_space<vmem>>, vector<1x256xf32>,
    %c4_i32 = arith.constant 4 : i32
    %57 = arith.addi %0, %c4_i32 : i32
    %58 = arith.index_cast %57 : i32 to index
    %59 = memref.load %arg1[%58] : memref<8xi32, #tpu.memory_space<smem>>
    %60 = arith.addi %0, %c4_i32 : i32
    %61 = arith.index_cast %60 : i32 to index
    %62 = memref.load %arg2[%61] : memref<8xi32, #tpu.memory_space<smem>>
    %63 = arith.index_cast %59 : i32 to index
    %c0_15 = arith.constant 0 : index
    %64 = vector.load %arg4[%63, %c0_15] : memref<10x128xf32, #tpu.memory_space<vmem>>, vector<1x128xf32>
    %65 = arith.index_cast %c4_i32 : i32 to index
    %c0_16 = arith.constant 0 : index
    %66 = vector.load %arg11[%65, %c0_16] : memref<8x128xf32, #tpu.memory_space<vmem>>, vector<1x128xf32>
    tpu.vector_store %arg11[%65, %c0_16], %64 {strides = array<i32>} : memref<8x128xf32, #tpu.memory_space<vmem>>, vector<1x128xf32>,
    %67 = arith.index_cast %62 : i32 to index
    %c0_17 = arith.constant 0 : index
    %68 = vector.load %arg5[%67, %c0_17] : memref<20x256xf32, #tpu.memory_space<vmem>>, vector<1x256xf32>
    %69 = arith.index_cast %c4_i32 : i32 to index
    %c0_18 = arith.constant 0 : index
    %70 = vector.load %arg12[%69, %c0_18] : memref<8x256xf32, #tpu.memory_space<vmem>>, vector<1x256xf32>
    tpu.vector_store %arg12[%69, %c0_18], %68 {strides = array<i32>} : memref<8x256xf32, #tpu.memory_space<vmem>>, vector<1x256xf32>,
    %c5_i32 = arith.constant 5 : i32
    %71 = arith.addi %0, %c5_i32 : i32
    %72 = arith.index_cast %71 : i32 to index
    %73 = memref.load %arg1[%72] : memref<8xi32, #tpu.memory_space<smem>>
    %74 = arith.addi %0, %c5_i32 : i32
    %75 = arith.index_cast %74 : i32 to index
    %76 = memref.load %arg2[%75] : memref<8xi32, #tpu.memory_space<smem>>
    %77 = arith.index_cast %73 : i32 to index
    %c0_19 = arith.constant 0 : index
    %78 = vector.load %arg4[%77, %c0_19] : memref<10x128xf32, #tpu.memory_space<vmem>>, vector<1x128xf32>
    %79 = arith.index_cast %c5_i32 : i32 to index
    %c0_20 = arith.constant 0 : index
    %80 = vector.load %arg11[%79, %c0_20] : memref<8x128xf32, #tpu.memory_space<vmem>>, vector<1x128xf32>
    tpu.vector_store %arg11[%79, %c0_20], %78 {strides = array<i32>} : memref<8x128xf32, #tpu.memory_space<vmem>>, vector<1x128xf32>,
    %81 = arith.index_cast %76 : i32 to index
    %c0_21 = arith.constant 0 : index
    %82 = vector.load %arg5[%81, %c0_21] : memref<20x256xf32, #tpu.memory_space<vmem>>, vector<1x256xf32>
    %83 = arith.index_cast %c5_i32 : i32 to index
    %c0_22 = arith.constant 0 : index
    %84 = vector.load %arg12[%83, %c0_22] : memref<8x256xf32, #tpu.memory_space<vmem>>, vector<1x256xf32>
    tpu.vector_store %arg12[%83, %c0_22], %82 {strides = array<i32>} : memref<8x256xf32, #tpu.memory_space<vmem>>, vector<1x256xf32>,
    %c6_i32 = arith.constant 6 : i32
    %85 = arith.addi %0, %c6_i32 : i32
    %86 = arith.index_cast %85 : i32 to index
    %87 = memref.load %arg1[%86] : memref<8xi32, #tpu.memory_space<smem>>
    %88 = arith.addi %0, %c6_i32 : i32
    %89 = arith.index_cast %88 : i32 to index
    %90 = memref.load %arg2[%89] : memref<8xi32, #tpu.memory_space<smem>>
    %91 = arith.index_cast %87 : i32 to index
    %c0_23 = arith.constant 0 : index
    %92 = vector.load %arg4[%91, %c0_23] : memref<10x128xf32, #tpu.memory_space<vmem>>, vector<1x128xf32>
    %93 = arith.index_cast %c6_i32 : i32 to index
    %c0_24 = arith.constant 0 : index
    %94 = vector.load %arg11[%93, %c0_24] : memref<8x128xf32, #tpu.memory_space<vmem>>, vector<1x128xf32>
    tpu.vector_store %arg11[%93, %c0_24], %92 {strides = array<i32>} : memref<8x128xf32, #tpu.memory_space<vmem>>, vector<1x128xf32>,
    %95 = arith.index_cast %90 : i32 to index
    %c0_25 = arith.constant 0 : index
    %96 = vector.load %arg5[%95, %c0_25] : memref<20x256xf32, #tpu.memory_space<vmem>>, vector<1x256xf32>
    %97 = arith.index_cast %c6_i32 : i32 to index
    %c0_26 = arith.constant 0 : index
    %98 = vector.load %arg12[%97, %c0_26] : memref<8x256xf32, #tpu.memory_space<vmem>>, vector<1x256xf32>
    tpu.vector_store %arg12[%97, %c0_26], %96 {strides = array<i32>} : memref<8x256xf32, #tpu.memory_space<vmem>>, vector<1x256xf32>,
    %c7_i32 = arith.constant 7 : i32
    %99 = arith.addi %0, %c7_i32 : i32
    %100 = arith.index_cast %99 : i32 to index
    %101 = memref.load %arg1[%100] : memref<8xi32, #tpu.memory_space<smem>>
    %102 = arith.addi %0, %c7_i32 : i32
    %103 = arith.index_cast %102 : i32 to index
    %104 = memref.load %arg2[%103] : memref<8xi32, #tpu.memory_space<smem>>
    %105 = arith.index_cast %101 : i32 to index
    %c0_27 = arith.constant 0 : index
    %106 = vector.load %arg4[%105, %c0_27] : memref<10x128xf32, #tpu.memory_space<vmem>>, vector<1x128xf32>
    %107 = arith.index_cast %c7_i32 : i32 to index
    %c0_28 = arith.constant 0 : index
    %108 = vector.load %arg11[%107, %c0_28] : memref<8x128xf32, #tpu.memory_space<vmem>>, vector<1x128xf32>
    tpu.vector_store %arg11[%107, %c0_28], %106 {strides = array<i32>} : memref<8x128xf32, #tpu.memory_space<vmem>>, vector<1x128xf32>,
    %109 = arith.index_cast %104 : i32 to index
    %c0_29 = arith.constant 0 : index
    %110 = vector.load %arg5[%109, %c0_29] : memref<20x256xf32, #tpu.memory_space<vmem>>, vector<1x256xf32>
    %111 = arith.index_cast %c7_i32 : i32 to index
    %c0_30 = arith.constant 0 : index
    %112 = vector.load %arg12[%111, %c0_30] : memref<8x256xf32, #tpu.memory_space<vmem>>, vector<1x256xf32>
    tpu.vector_store %arg12[%111, %c0_30], %110 {strides = array<i32>} : memref<8x256xf32, #tpu.memory_space<vmem>>, vector<1x256xf32>,
    %c8_i32_31 = arith.constant 8 : i32
    %c0_32 = arith.constant 0 : index
    %c0_33 = arith.constant 0 : index
    %113 = vector.load %arg12[%c0_32, %c0_33] : memref<8x256xf32, #tpu.memory_space<vmem>>, vector<8x256xf32>
    %c0_34 = arith.constant 0 : index
    %c0_35 = arith.constant 0 : index
    %114 = vector.load %arg6[%c0_34, %c0_35] : memref<256x128xf32, #tpu.memory_space<vmem>>, vector<256x128xf32>
    %cst = arith.constant dense<0.000000e+00> : vector<8x128xf32>
    %115 = tpu.matmul %113, %114, %cst {dimension_numbers = #tpu.dot_dimension_numbers<[1], [0], [0], [1], [0, 0, 1, 1], [], []>, precision = #tpu.contract_precision<fp32>} : vector<8x256xf32>, vector<256x128xf32>, vector<8x128xf32> -> vector<8x128xf32>
    %c0_36 = arith.constant 0 : index
    %c0_37 = arith.constant 0 : index
    %116 = vector.load %arg7[%c0_36, %c0_37] : memref<1x128xf32, #tpu.memory_space<vmem>>, vector<1x128xf32>
    %117 = vector.broadcast %116 : vector<1x128xf32> to vector<8x128xf32>
    %118 = arith.addf %115, %117 : vector<8x128xf32>
    %c0_38 = arith.constant 0 : index
    %c0_39 = arith.constant 0 : index
    %119 = vector.load %arg11[%c0_38, %c0_39] : memref<8x128xf32, #tpu.memory_space<vmem>>, vector<8x128xf32>
    %120 = arith.mulf %119, %118 : vector<8x128xf32>
    %c0_40 = arith.constant 0 : index
    %c0_41 = arith.constant 0 : index
    %121 = vector.load %arg8[%c0_40, %c0_41] : memref<128x128xf32, #tpu.memory_space<vmem>>, vector<128x128xf32>
    %cst_42 = arith.constant dense<0.000000e+00> : vector<8x128xf32>
    %122 = tpu.matmul %120, %121, %cst_42 {dimension_numbers = #tpu.dot_dimension_numbers<[1], [0], [0], [1], [0, 0, 1, 1], [], []>, precision = #tpu.contract_precision<fp32>} : vector<8x128xf32>, vector<128x128xf32>, vector<8x128xf32> -> vector<8x128xf32>
    %c0_43 = arith.constant 0 : index
    %c0_44 = arith.constant 0 : index
    %123 = vector.load %arg9[%c0_43, %c0_44] : memref<1x128xf32, #tpu.memory_space<vmem>>, vector<1x128xf32>
    %124 = vector.broadcast %123 : vector<1x128xf32> to vector<8x128xf32>
    %125 = arith.addf %122, %124 : vector<8x128xf32>
    %c0_45 = arith.constant 0 : index
    %c0_46 = arith.constant 0 : index
    %126 = vector.load %arg10[%c0_45, %c0_46] : memref<8x128xf32, #tpu.memory_space<vmem>>, vector<8x128xf32>
    tpu.vector_store %arg10[%c0_45, %c0_46], %125 {strides = array<i32>} : memref<8x128xf32, #tpu.memory_space<vmem>>, vector<8x128xf32>,
    return
  }
  func.func @transform_0(%arg0: i32, %arg1: memref<8xi32, #tpu.memory_space<smem>>, %arg2: memref<8xi32, #tpu.memory_space<smem>>, %arg3: memref<1xi32, #tpu.memory_space<smem>>) -> (i32, i32) {
    %c0_i32 = arith.constant 0 : i32
    %c0_i32_0 = arith.constant 0 : i32
    %c0_i32_1 = arith.constant 0 : i32
    return %c0_i32, %c0_i32_0 : i32, i32
  }
  func.func @transform_1(%arg0: i32, %arg1: memref<8xi32, #tpu.memory_space<smem>>, %arg2: memref<8xi32, #tpu.memory_space<smem>>, %arg3: memref<1xi32, #tpu.memory_space<smem>>) -> (i32, i32) {
    %c0_i32 = arith.constant 0 : i32
    %c0_i32_0 = arith.constant 0 : i32
    %c0_i32_1 = arith.constant 0 : i32
    return %c0_i32, %c0_i32_0 : i32, i32
  }
  func.func @transform_2(%arg0: i32, %arg1: memref<8xi32, #tpu.memory_space<smem>>, %arg2: memref<8xi32, #tpu.memory_space<smem>>, %arg3: memref<1xi32, #tpu.memory_space<smem>>) -> (i32, i32) {
    %c0_i32 = arith.constant 0 : i32
    %c0_i32_0 = arith.constant 0 : i32
    %c0_i32_1 = arith.constant 0 : i32
    return %c0_i32, %c0_i32_0 : i32, i32
  }
  func.func @transform_3(%arg0: i32, %arg1: memref<8xi32, #tpu.memory_space<smem>>, %arg2: memref<8xi32, #tpu.memory_space<smem>>, %arg3: memref<1xi32, #tpu.memory_space<smem>>) -> (i32, i32) {
    %c0_i32 = arith.constant 0 : i32
    %c0_i32_0 = arith.constant 0 : i32
    %c0_i32_1 = arith.constant 0 : i32
    return %c0_i32, %c0_i32_0 : i32, i32
  }
  func.func @transform_4(%arg0: i32, %arg1: memref<8xi32, #tpu.memory_space<smem>>, %arg2: memref<8xi32, #tpu.memory_space<smem>>, %arg3: memref<1xi32, #tpu.memory_space<smem>>) -> (i32, i32) {
    %c0_i32 = arith.constant 0 : i32
    %c0_i32_0 = arith.constant 0 : i32
    %c0_i32_1 = arith.constant 0 : i32
    return %c0_i32, %c0_i32_0 : i32, i32
  }
  func.func @transform_5(%arg0: i32, %arg1: memref<8xi32, #tpu.memory_space<smem>>, %arg2: memref<8xi32, #tpu.memory_space<smem>>, %arg3: memref<1xi32, #tpu.memory_space<smem>>) -> (i32, i32) {
    %c0_i32 = arith.constant 0 : i32
    %c0_i32_0 = arith.constant 0 : i32
    %c0_i32_1 = arith.constant 0 : i32
    return %c0_i32, %c0_i32_0 : i32, i32
  }
  func.func @transform_6(%arg0: i32, %arg1: memref<8xi32, #tpu.memory_space<smem>>, %arg2: memref<8xi32, #tpu.memory_space<smem>>, %arg3: memref<1xi32, #tpu.memory_space<smem>>) -> (i32, i32) {
    %c0_i32 = arith.constant 0 : i32
    %c0_i32_0 = arith.constant 0 : i32
    return %arg0, %c0_i32 : i32, i32
  }
}

</mosaic_0001>

<bundles_post_ra>
// kernel: tpu_custom_call.1
= control target key start
LH: loop header
LB: loop body
LE: loop exit
PB: predicated region body
PF: predicated region fallthrough
CT: control target
= control target key end

     0   :  { %s4055_s0 = inlined_call_operand.vmem [shape: s32[8], index: 0, kind: input, shape index: {}]   ;;  %s4056_s2 = inlined_call_operand.<no memory space> [shape: s32[1], index: 2, kind: input, shape index: {}]   ;;  %s4057_s3 = inlined_call_operand.hbm [shape: f32[10,128], index: 3, kind: input, shape index: {}]   ;;  %s4058_s4 = inlined_call_operand.hbm [shape: f32[20,256], index: 4, kind: input, shape index: {}]   ;;  %s4059_s5 = inlined_call_operand.hbm [shape: f32[256,128], index: 5, kind: input, shape index: {}]   ;;  %s4060_s6 = inlined_call_operand.vmem [shape: f32[1,128], index: 6, kind: input, shape index: {}]   ;;  %s4061_s7 = inlined_call_operand.hbm [shape: f32[128,128], index: 7, kind: input, shape index: {}]   ;;  %s4062_s8 = inlined_call_operand.vmem [shape: f32[1,128], index: 8, kind: input, shape index: {}]   ;;  %s4063_s9 = inlined_call_operand.hbm [shape: f32[8,128], index: 9, kind: output, shape index: {}]   ;;  %s4064_s1 = inlined_call_operand.vmem [shape: s32[8], index: 1, kind: input, shape index: {}]  }
   0x1   :  { %s14_s10 = sshll.u32 %s4055_s0, 4  ;;  %s18_s13 = sshll.u32 %s4064_s1, 4  ;;  %s15_s10 = int_to_ptr.vmem [resolvable:$true] %s14_s10  ;;  %s19_s13 = int_to_ptr.vmem [resolvable:$true] %s18_s13 }
   0x2   :  { %s2782_s14 = scalar_lea.vmem %s15_s10, 16  ;;  %p2787_p1 = scmp.lt.s32.totalorder %s15_s10, %s15_s10 }
   0x3   :  { %p2783_p0 = scmp.ne.s32.totalorder %s15_s10, %s2782_s14  ;;  %p2788_p2 = scmp.lt.s32.totalorder %s2782_s14, %s2782_s14 }
   0x5   :  { %p2789_p3 = por %p2788_p2, %p2787_p1 }
   0x7   :  { %p2790_p4 = pnand %p2789_p3, %p2783_p0 }
   0x9   :  { %2793 = shalt.err (!%p2790_p4)  }
   0xa   :  { %s2926_s15 = smov [#allocation5]   ;;  %s2794_s16 = scalar_lea.vmem %s19_s13, 16 }
   0xb   :  { %17 = dma.vmem_to_smem %s15_s10, 16, %s2926_s15, [#allocation4] }
   0xc   :  { %p2795_p5 = scmp.ne.s32.totalorder %s19_s13, %s2794_s16  ;;  %p2799_p6 = scmp.lt.s32.totalorder %s19_s13, %s19_s13 }
   0xd   :  { %p2800_p7 = scmp.lt.s32.totalorder %s2794_s16, %s2794_s16 }
   0xf   :  { %p2801_p8 = por %p2800_p7, %p2799_p6 }
  0x11   :  { %p2802_p9 = pnand %p2801_p8, %p2795_p5 }
  0x13   :  { %2805 = shalt.err (!%p2802_p9)  }
  0x14   :  { %s2927_s0 = smov [#allocation6]  }
  0x15   :  { %21 = dma.vmem_to_smem %s19_s13, 16, %s2927_s0, [#allocation4] }
  0x16   :  { %2916 = dma.done.wait [#allocation4], 32 }
  0x17   :  { %2917 = vsyncadd [#allocation4], 4294967264 }
  0x18   :  { %24 = sfence }
  0x19   :  { %25 = vsyncpa [#allocation9], 0 }
  0x1a   :  { %26 = vsyncpa [#allocation12], 0 }
  0x1b   :  { %27 = vsyncpa [#allocation15], 0 }
  0x1c   :  { %28 = vsyncpa [#allocation10], 0  ;;  %s2928_s1 = smov [#allocation11]   ;;  %s2806_s20 = scalar_lea.hbm %s4058_s4, 768 }
  0x1d   :  { %s46_s17 = sshll.u32 %s2928_s1, 4  ;;  %p2807_p10 = scmp.ne.s32.totalorder %s4058_s4, %s2806_s20  ;;  %s47_s17 = int_to_ptr.vmem [resolvable:$true] %s46_s17 }
  0x1e   :  { %p2810_p11 = scmp.lt.u32.totalorder %s2806_s20, %s4058_s4 }
  0x20   :  { %p2812_p12 = pnand %p2810_p11, %p2807_p10 }
  0x22   :  { %2815 = shalt.err (!%p2812_p12)
}
  0x23   :  { %s2816_s25 = scalar_lea.vmem %s47_s17, 768  ;;  %p2821_p0 = scmp.lt.s32.totalorder %s47_s17, %s47_s17 }
  0x24   :  { %p2817_p13 = scmp.ne.s32.totalorder %s47_s17, %s2816_s25  ;;  %p2822_p1 = scmp.lt.s32.totalorder %s2816_s25, %s2816_s25 }
  0x26   :  { %p2823_p2 = por %p2822_p1, %p2821_p0 }
  0x28   :  { %p2824_p3 = pnand %p2823_p2, %p2817_p13 }
  0x2a   :  { %2827 = shalt.err (!%p2824_p3)
}
  0x2b   :  { %s2929_s26 = smov 256   ;;  %s2930_s2 = smov 16  }
  0x2c   :  { %52 = dma.hbm_to_vmem [thread:$0]  %s4058_s4, 768, %s47_s17, [#allocation12], %s2929_s26, %s2929_s26, %s2930_s2  }
  0x2d   :  { %s2931_s29 = smov [#allocation8]   ;;  %s2828_s12 = scalar_lea.hbm %s4057_s3, 256 }
  0x2e   :  { %s34_s30 = sshll.u32 %s2931_s29, 4  ;;  %p2829_p4 = scmp.ne.s32.totalorder %s4057_s3, %s2828_s12  ;;  %s35_s30 = int_to_ptr.vmem [resolvable:$true] %s34_s30 }
  0x2f   :  { %p2832_p5 = scmp.lt.u32.totalorder %s2828_s12, %s4057_s3 }
  0x31   :  { %p2834_p6 = pnand %p2832_p5, %p2829_p4 }
  0x33   :  { %2837 = shalt.err (!%p2834_p6)
}
  0x34   :  { %s2838_s0 = scalar_lea.vmem %s35_s30, 256  ;;  %p2843_p8 = scmp.lt.s32.totalorder %s35_s30, %s35_s30 }
  0x35   :  { %p2839_p7 = scmp.ne.s32.totalorder %s35_s30, %s2838_s0  ;;  %p2844_p9 = scmp.lt.s32.totalorder %s2838_s0, %s2838_s0 }
  0x37   :  { %p2845_p10 = por %p2844_p9, %p2843_p8 }
  0x39   :  { %p2846_p11 = pnand %p2845_p10, %p2839_p7 }
  0x3b   :  { %2849 = shalt.err (!%p2846_p11)
}
  0x3c   :  { %s2932_s4 = smov 128   ;;  %s2933_s1 = smov 8  }
  0x3d   :  { %40 = dma.hbm_to_vmem [thread:$0]  %s4057_s3, 256, %s35_s30, [#allocation9], %s2932_s4, %s2932_s4, %s2933_s1  }
  0x3e   :  { %s2934_s19 = smov [#allocation13]   ;;  %s2935_s21 = smov [#allocation14]  }
  0x3f   :  { %s58_s20 = sshll.u32 %s2934_s19, 4  ;;  %s72_s22 = sshll.u32 %s2935_s21, 4  ;;  %s59_s20 = int_to_ptr.vmem [resolvable:$true] %s58_s20  ;;  %s3023_s22 = int_to_ptr.vmem [resolvable:$true] %s72_s22 }
  0x40   :  { %s2850_s25 = scalar_lea.hbm %s4059_s5, 4096 }
  0x41   :  { %p2851_p12 = scmp.ne.s32.totalorder %s4059_s5, %s2850_s25  ;;  %p2854_p13 = scmp.lt.u32.totalorder %s2850_s25, %s4059_s5 }
  0x43   :  { %p2856_p0 = pnand %p2854_p13, %p2851_p12 }
  0x45   :  { %2859 = shalt.err (!%p2856_p0)
}
  0x46   :  { %s2860_s3 = scalar_lea.vmem %s59_s20, 4096  ;;  %p2865_p2 = scmp.lt.s32.totalorder %s59_s20, %s59_s20 }
  0x47   :  { %p2861_p1 = scmp.ne.s32.totalorder %s59_s20, %s2860_s3  ;;  %p2866_p3 = scmp.lt.s32.totalorder %s2860_s3, %s2860_s3 }
  0x49   :  { %p2867_p4 = por %p2866_p3, %p2865_p2 }
  0x4b   :  { %p2868_p5 = pnand %p2867_p4, %p2861_p1 }
  0x4d   :  { %2871 = shalt.err (!%p2868_p5)
}
  0x4e   :  { %64 = dma.hbm_to_vmem [thread:$0]  %s4059_s5, 4096, %s59_s20, [#allocation12], %s2932_s4, %s2932_s4, %s2933_s1  }
  0x4f   :  { %s2872_s12 = scalar_lea.hbm %s4061_s7, 2048 }
  0x50   :  { %p2873_p6 = scmp.ne.s32.totalorder %s4061_s7, %s2872_s12  ;;  %p2876_p7 = scmp.lt.u32.totalorder %s2872_s12, %s4061_s7 }
  0x52   :  { %p2878_p8 = pnand %p2876_p7, %p2873_p6 }
  0x54   :  { %2881 = shalt.err (!%p2878_p8)
}
  0x55   :  { %s2882_s0 = scalar_lea.vmem %s3023_s22, 2048  ;;  %p2887_p10 = scmp.lt.s32.totalorder %s3023_s22, %s3023_s22 }
  0x56   :  { %p2883_p9 = scmp.ne.s32.totalorder %s3023_s22, %s2882_s0  ;;  %p2888_p11 = scmp.lt.s32.totalorder %s2882_s0, %s2882_s0 }
  0x58   :  { %p2889_p12 = por %p2888_p11, %p2887_p10 }
  0x5a   :  { %p2890_p13 = pnand %p2889_p12, %p2883_p9 }
  0x5c   :  { %2893 = shalt.err (!%p2890_p13)
}
  0x5d   :  { %78 = dma.hbm_to_vmem [thread:$0]  %s4061_s7, 2048, %s3023_s22, [#allocation15], %s2932_s4, %s2932_s4, %s2933_s1  }
  0x5e   :  { %2918 = dma.done.wait [#allocation9], 256  }
  0x5f   :  { %2919 = vsyncadd [#allocation9], 4294967040 }
  0x60   :  { %2920 = dma.done.wait [#allocation12], 4864  }
  0x61   :  { %2921 = vsyncadd [#allocation12], 4294962432 }
  0x62   :  { %2922 = dma.done.wait [#allocation15], 2048  }
  0x63   :  { %2923 = vsyncadd [#allocation15], 4294965248  ;;  %s3060_s18 = sld [smem:[#allocation6]]  ;;  %s3062_s19 = sld [smem:[#allocation6 + $0x1]]  ;;  %v3068_v0 = vld [vmem:[#allocation13 + $0x80] sm:$0xff]  ;;  %v3070_v1 = vld [vmem:[#allocation13 + $0x88] sm:$0xff]  ;;  %v108_v25 = vlaneseq }
  0x64   :  { %s3064_s20 = sld [smem:[#allocation6 + $0x2]]  ;;  %s3066_s21 = sld [smem:[#allocation6 + $0x3]]  ;;  %v3072_v2 = vld [vmem:[#allocation13] sm:$0xff]  ;;  %v330_v3 = vand.u32 4294901760, %v3068_v0  ;;  %v333_v4 = vand.u32 4294901760, %v3070_v1  ;;  %v3078_v5 = vld [vmem:[#allocation13 + $0x8] sm:$0xff] }
  0x65   :  { %v282_v6 = vand.u32 4294901760, %v3072_v2  ;;  %v3081_v7 = vld [vmem:[#allocation13 + $0x90] sm:$0xff]  ;;  %v3083_v8 = vld [vmem:[#allocation13 + $0x98] sm:$0xff]  ;;  %v285_v9 = vand.u32 4294901760, %v3078_v5  ;;  %v3092_v14 = vld [vmem:[#allocation13 + $0xa0] sm:$0xff]  ;;  %s3106_s22 = sld [smem:[#allocation6 + $0x4]] }
  0x66   :  { %v336_v10 = vand.u32 4294901760, %v3081_v7  ;;  %v339_v11 = vand.u32 4294901760, %v3083_v8  ;;  %v3088_v12 = vld [vmem:[#allocation13 + $0x10] sm:$0xff]  ;;  %v3090_v13 = vld [vmem:[#allocation13 + $0x18] sm:$0xff]  ;;  %v3098_v15 = vpack.c.bf16 %v333_v4, %v330_v3  ;;  %v3100_v16 = vld [vmem:[#allocation13 + $0xa8] sm:$0xff]  ;;  %s3123_s24 = sld [smem:[#allocation6 + $0x5]]  ;;  %v3234_v61 = vsub.f32 %v3068_v0, %v330_v3 }
  0x67   :  { %v3102_v17 = vld [vmem:[#allocation13 + $0x20] sm:$0xff]  ;;  %v3104_v18 = vld [vmem:[#allocation13 + $0x28] sm:$0xff]  ;;  %v3112_v19 = vpack.c.bf16 %v285_v9, %v282_v6  ;;  %v3120_v21 = vld [vmem:[#allocation13 + $0xb0] sm:$0xff]  ;;  %v288_v22 = vand.u32 4294901760, %v3088_v12  ;;  %v291_v23 = vand.u32 4294901760, %v3090_v13  ;;  %v342_v24 = vand.u32 4294901760, %v3092_v14 }
  0x68   :  { %4146 = vst [vmem:[#allocation22_spill] sm:$0xff] %v3098_v15  ;;  %v3118_v20 = vpack.c.bf16 %v339_v11, %v336_v10  ;;  %2422 = vmatprep.subr.bf16.mxu1 %v3098_v15  ;;  %v345_v26 = vand.u32 4294901760, %v3100_v16  ;;  %v294_v27 = vand.u32 4294901760, %v3102_v17  ;;  %v297_v28 = vand.u32 4294901760, %v3104_v18  ;;  %v3136_v29 = vld [vmem:[#allocation13 + $0xb8] sm:$0xff]  ;;  %s3138_s2 = sld [smem:[#allocation6 + $0x6]] }
  0x69   :  { %s99_s7 = sshra.s32 %s3060_s18, 3  ;;  %s102_s4 = sand.u32 7, %s3060_s18  ;;  %4147 = vst [vmem:[#allocation23_spill] sm:$0xff] %v3112_v19  ;;  %2424 = vmatpush3.bf16.msra.mxu1 %v3112_v19  ;;  %v3145_v30 = vpack.c.bf16 %v291_v23, %v288_v22  ;;  %v4074_v31 = vand.u32 4294901760, %v3120_v21  ;;  %v3148_v32 = vld [vmem:[#allocation13 + $0x30] sm:$0xff]  ;;  %v3150_v33 = vld [vmem:[#allocation13 + $0x38] sm:$0xff]  ;;  %v3239_v62 = vsub.f32 %v3070_v1, %v333_v4 }
  0x6a   :  { %s1891_s1 = sshll.u32 %s99_s7, 4  ;;  %4148 = vst [vmem:[#allocation24_spill] sm:$0xff] %v3118_v20  ;;  %s120_s23 = sshra.s32 %s3062_s19, 3  ;;  %2426 = vmatprep.subr.bf16.mxu1 %v3118_v20  ;;  %v3158_v34 = vpack.c.bf16 %v345_v26, %v342_v24  ;;  %v3160_v35 = vld [vmem:[#allocation13 + $0xc0] sm:$0xff]  ;;  %v3162_v36 = vld [vmem:[#allocation13 + $0xc8] sm:$0xff]  ;;  %v4073_v37 = vand.u32 4294901760, %v3136_v29  ;;  %v3175_v39 = vpack.c.bf16 %v297_v28, %v294_v27 }
  0x6b   :  { %s3129_s25 = sadd.s32 %s1891_s1, %s102_s4  ;;  %s123_s26 = sand.u32 7, %s3062_s19  ;;  %4149 = vst [vmem:[#allocation25_spill] sm:$0xff] %v3145_v30  ;;  %vm3165_vm0 = vcmp.lt.s32.totalorder %v108_v25, 256  ;;  %v4070_v40 = vand.u32 4294901760, %v3148_v32  ;;  %v4069_v41 = vand.u32 4294901760, %v3150_v33  ;;  %v3179_v42 = vld [vmem:[#allocation13 + $0x40] sm:$0xff] }
  0x6c   :  { %s1892_s27 = sshll.u32 %s120_s23, 4  ;;  %s3152_s28 = sld [smem:[#allocation6 + $0x7]]  ;;  %4150 = vst [vmem:[#allocation26_spill] sm:$0xff] %v3158_v34  ;;  %4153 = vst [vmem:[#allocation27_spill] sm:$0xff] %v3175_v39  ;;  %v3181_v43 = vld [vmem:[#allocation13 + $0x48] sm:$0xff]  ;;  %v3183_v44 = vld [vmem:[#allocation13 + $0xd0] sm:$0xff]  ;;  %v3190_v45 = vpack.c.bf16 %v4073_v37, %v4074_v31  ;;  %v3295_v31 = vsub.f32 %v3081_v7, %v336_v10 }
  0x6d   :  { %s126_s3 = sadd.s32 %s1892_s27, %s123_s26  ;;  %s138_s29 = sshra.s32 %s3064_s20, 3  ;;  %2428 = vmatpush3.bf16.msra.mxu1 %v3145_v30  ;;  %v4068_v46 = vand.u32 4294901760, %v3160_v35  ;;  %v4067_v47 = vand.u32 4294901760, %v3162_v36  ;;  %v3196_v49 = vld [vmem:[#allocation13 + $0xd8] sm:$0xff]  ;;  %v4066_v51 = vand.u32 4294901760, %v3179_v42  ;;  %v4065_v52 = vand.u32 4294901760, %v3181_v43 }
  0x6e   :  { %2430 = vmatprep.subr.bf16.mxu1 %v3158_v34  ;;  %4154 = vst [vmem:[#allocation28_spill] sm:$0xff] %v3190_v45  ;;  %s106_s30 = scalar_lea.vmem [#allocation11], %s3129_s25  ;;  %s141_s10 = sand.u32 7, %s3064_s20  ;;  %v3211_v53 = vpack.c.bf16 %v4069_v41, %v4070_v40  ;;  %v3213_v54 = vld [vmem:[#allocation13 + $0x50] sm:$0xff]  ;;  %v4072_v56 = vand.u32 4294901760, %v3183_v44  ;;  %v4071_v57 = vand.u32 4294901760, %v3196_v49  ;;  %v3280_v40 = vsub.f32 %v3072_v2, %v282_v6 }
  0x6f   :  { %v107_v48 = vld [vmem:[%s106_s30] ss:$8 sm:$0x3]  ;;  %s127_s11 = scalar_lea.vmem [#allocation11], %s126_s3  ;;  %s1893_s12 = sshll.u32 %s138_s29, 4  ;;  %v3220_v55 = vpack.c.bf16 %v4067_v47, %v4068_v46  ;;  %v3224_v58 = vld [vmem:[#allocation13 + $0x58] sm:$0xff]  ;;  %v3246_v25 = vpack.c.bf16 %v4065_v52, %v4066_v51  ;;  %v3300_v2 = vsub.f32 %v3083_v8, %v339_v11 }
  0x70   :  { %112 = vst.msk [vmem:[#allocation3] ss:$8 sm:$0x3] %vm3165_vm0, %v107_v48  ;;  %v128_v50 = vld [vmem:[%s127_s11] ss:$8 sm:$0x3]  ;;  %s144_s14 = sadd.s32 %s1893_s12, %s141_s10 }
  0x71   :  { %s156_s13 = sshra.s32 %s3066_s21, 3  ;;  %130 = vst.msk [vmem:[#allocation3 + $0x1] ss:$8 sm:$0x3] %vm3165_vm0, %v128_v50  ;;  %s159_s15 = sand.u32 7, %s3066_s21  ;;  %2432 = vmatpush3.bf16.msra.mxu1 %v3175_v39  ;;  %4155 = vst [vmem:[#allocation29_spill] sm:$0xff] %v3211_v53 }
  0x72   :  { %s1894_s16 = sshll.u32 %s156_s13, 4  ;;  %2434 = vmatprep.subr.bf16.mxu1 %v3190_v45  ;;  %4156 = vst [vmem:[#allocation30_spill] sm:$0xff] %v3220_v55  ;;  %v3226_v59 = vld [vmem:[#allocation13 + $0xe0] sm:$0xff]  ;;  %v3228_v60 = vld [vmem:[#allocation13 + $0xe8] sm:$0xff]  ;;  %s174_s5 = sshra.s32 %s3106_s22, 3  ;;  %4157 = vst [vmem:[#allocation31_spill] sm:$0xff] %v3246_v25 }
  0x73   :  { %s162_s0 = sadd.s32 %s1894_s16, %s159_s15  ;;  %s145_s17 = scalar_lea.vmem [#allocation11], %s144_s14  ;;  %v3248_v48 = vld [vmem:[#allocation13 + $0x60] sm:$0xff]  ;;  %v4082_v1 = vand.u32 4294901760, %v3213_v54  ;;  %v4077_v3 = vand.u32 4294901760, %v3224_v58  ;;  %v4076_v4 = vand.u32 4294901760, %v3226_v59  ;;  %v4075_v50 = vand.u32 4294901760, %v3228_v60 }
  0x74   :  { %v146_v63 = vld [vmem:[%s145_s17] ss:$8 sm:$0x3]  ;;  %s177_s18 = sand.u32 7, %s3106_s22  ;;  %s163_s19 = scalar_lea.vmem [#allocation11], %s162_s0  ;;  %v3272_v47 = vld [vmem:[#allocation13 + $0xf8] sm:$0xff] }
  0x75   :  { %148 = vst.msk [vmem:[#allocation3 + $0x2] ss:$8 sm:$0x3] %vm3165_vm0, %v146_v63  ;;  %v164_v0 = vld [vmem:[%s163_s19] ss:$8 sm:$0x3]  ;;  %2436 = vmatpush3.bf16.msra.mxu1 %v3211_v53  ;;  %v3268_v63 = vpack.c.bf16 %v4071_v57, %v4072_v56  ;;  %v3285_v57 = vsub.f32 %v3078_v5, %v285_v9  ;;  %v3307_v5 = vpack.c.bf16 %v4077_v3, %v4082_v1 }
  0x76   :  { %s1895_s20 = sshll.u32 %s174_s5, 4  ;;  %s192_s21 = sshra.s32 %s3123_s24, 3  ;;  %v3258_v52 = vld [vmem:[#allocation13 + $0x68] sm:$0xff]  ;;  %166 = vst.msk [vmem:[#allocation3 + $0x3] ss:$8 sm:$0x3] %vm3165_vm0, %v164_v0  ;;  %2438 = vmatprep.subr.bf16.mxu1 %v3220_v55  ;;  %v3313_v6 = vpack.c.bf16 %v4075_v50, %v4076_v4  ;;  %v3335_v4 = vsub.f32 %v3088_v12, %v288_v22  ;;  %v3340_v3 = vsub.f32 %v3090_v13, %v291_v23 }
  0x77   :  { %s180_s7 = sadd.s32 %s1895_s20, %s177_s18  ;;  %s195_s4 = sand.u32 7, %s3123_s24  ;;  %4158 = vst [vmem:[#allocation32_spill] sm:$0xff] %v3268_v63  ;;  %v3270_v51 = vld [vmem:[#allocation13 + $0xf0] sm:$0xff]  ;;  %v4078_v0 = vand.u32 4294901760, %v3234_v61  ;;  %v4079_v41 = vand.u32 4294901760, %v3239_v62  ;;  %v4081_v56 = vand.u32 4294901760, %v3248_v48  ;;  %v3355_v12 = vsub.f32 %v3102_v17, %v294_v27 }
  0x78   :  { %s1896_s1 = sshll.u32 %s192_s21, 4  ;;  %s181_s22 = scalar_lea.vmem [#allocation11], %s180_s7  ;;  %v4080_v37 = vand.u32 4294901760, %v3258_v52  ;;  %4159 = vst [vmem:[#allocation33_spill] sm:$0xff] %v3307_v5  ;;  %4160 = vst [vmem:[#allocation34_spill] sm:$0xff] %v3313_v6  ;;  %v3315_v7 = vld [vmem:[#allocation13 + $0x70] sm:$0xff]  ;;  %v3360_v13 = vsub.f32 %v3104_v18, %v297_v28 }
  0x79   :  { %v182_v46 = vld [vmem:[%s181_s22] ss:$8 sm:$0x3]  ;;  %s198_s23 = sadd.s32 %s1896_s1, %s195_s4  ;;  %s210_s25 = sshra.s32 %s3138_s2, 3  ;;  %2440 = vmatpush3.bf16.msra.mxu1 %v3246_v25  ;;  %v4084_v8 = vand.u32 4294901760, %v3270_v51  ;;  %v4083_v10 = vand.u32 4294901760, %v3272_v47  ;;  %v516_v50 = vsub.f32 %v3239_v62, %v4079_v41 }
  0x7a   :  { %184 = vst.msk [vmem:[#allocation3 + $0x4] ss:$8 sm:$0x3] %vm3165_vm0, %v182_v46  ;;  %s213_s24 = sand.u32 7, %s3138_s2  ;;  %s199_s26 = scalar_lea.vmem [#allocation11], %s198_s23  ;;  %2442 = vmatprep.subr.bf16.mxu1 %v3268_v63  ;;  %v3321_v11 = vld [vmem:[#allocation13 + $0x78] sm:$0xff]  ;;  %v509_v46 = vsub.f32 %v3234_v61, %v4078_v0  ;;  %v3350_v0 = vsub.f32 %v3100_v16, %v345_v26 }
  0x7b   :  { %v200_v9 = vld [vmem:[%s199_s26] ss:$8 sm:$0x3]  ;;  %s1897_s2 = sshll.u32 %s210_s25, 4  ;;  %s228_s27 = sshra.s32 %s3152_s28, 3  ;;  %v4090_v16 = vand.u32 4294901760, %v3315_v7  ;;  %v3381_v26 = vpack.c.bf16 %v4083_v10, %v4084_v8 }
  0x7c   :  { %202 = vst.msk [vmem:[#allocation3 + $0x5] ss:$8 sm:$0x3] %vm3165_vm0, %v200_v9  ;;  %s216_s3 = sadd.s32 %s1897_s2, %s213_s24  ;;  %s231_s29 = sand.u32 7, %s3152_s28  ;;  %v3345_v9 = vsub.f32 %v3092_v14, %v342_v24  ;;  %v3366_v14 = vpack.c.bf16 %v4080_v37, %v4081_v56  ;;  %v4088_v17 = vand.u32 4294901760, %v3321_v11  ;;  %v4085_v18 = vand.u32 4294901760, %v3280_v40 }
  0x7d   :  { %s1898_s28 = sshll.u32 %s228_s27, 4  ;;  %s217_s30 = scalar_lea.vmem [#allocation11], %s216_s3  ;;  %2444 = vmatpush3.bf16.msra.mxu1 %v3307_v5  ;;  %v4086_v23 = vand.u32 4294901760, %v3285_v57  ;;  %4162 = vst [vmem:[#allocation36_spill] sm:$0xff] %v3381_v26  ;;  %v510_v28 = vand.u32 4294901760, %v509_v46  ;;  %v517_v41 = vand.u32 4294901760, %v516_v50 }
  0x7e   :  { %4161 = vst [vmem:[#allocation35_spill] sm:$0xff] %v3366_v14  ;;  %v218_v22 = vld [vmem:[%s217_s30] ss:$8 sm:$0x3]  ;;  %s234_s10 = sadd.s32 %s1898_s28, %s231_s29  ;;  %2446 = vmatprep.subr.bf16.mxu1 %v3313_v6  ;;  %v4163_v37 = vand.u32 4294901760, %v3120_v21  ;;  %v4164_v1 = vand.u32 4294901760, %v3136_v29 }
  0x7f   :  { %220 = vst.msk [vmem:[#allocation3 + $0x6] ss:$8 sm:$0x3] %vm3165_vm0, %v218_v22  ;;  %s235_s11 = scalar_lea.vmem [#allocation11], %s234_s10  ;;  %v4087_v22 = vand.u32 4294901760, %v3300_v2  ;;  %v4089_v10 = vand.u32 4294901760, %v3335_v4 }
  0x80   :  { %v236_v27 = vld [vmem:[%s235_s11] ss:$8 sm:$0x3]  ;;  %v3387_v56 = vsub.f32 %v3120_v21, %v4163_v37  ;;  %v3392_v24 = vsub.f32 %v3136_v29, %v4164_v1  ;;  %v4165_v50 = vand.u32 4294901760, %v3148_v32  ;;  %v4166_v21 = vand.u32 4294901760, %v3150_v33  ;;  %s94_s12 = sld [smem:[#allocation5]] }
  0x81   :  { %238 = vst.msk [vmem:[#allocation3 + $0x7] ss:$8 sm:$0x3] %vm3165_vm0, %v236_v27  ;;  %v4167_v29 = vand.u32 4294901760, %v3160_v35  ;;  %v4168_v38 = vand.u32 4294901760, %v3162_v36  ;;  %v4169_v46 = vand.u32 4294901760, %v3179_v42  ;;  %2448 = vmatpush3.bf16.msra.mxu1 %v3366_v14 }
  0x82   :  { %v3401_v8 = vsub.f32 %v3148_v32, %v4165_v50  ;;  %v3406_v37 = vsub.f32 %v3150_v33, %v4166_v21  ;;  %v4170_v50 = vand.u32 4294901760, %v3181_v43  ;;  %2450 = vmatprep.subr.bf16.mxu1 %v3381_v26  ;;  %v4191_v55 = vand.u32 4294901760, %v3355_v12  ;;  %s1861_s13 = sld [smem:[#allocation5 + $0x1]]  ;;  %s1865_s14 = sld [smem:[#allocation5 + $0x2]] }
  0x83   :  { %v3411_v1 = vsub.f32 %v3160_v35, %v4167_v29  ;;  %v3416_v27 = vsub.f32 %v3162_v36, %v4168_v38  ;;  %v3421_v32 = vsub.f32 %v3179_v42, %v4169_v46  ;;  %v3433_v35 = vpack.c.bf16 %v4088_v17, %v4090_v16  ;;  %s1869_s15 = sld [smem:[#allocation5 + $0x3]]  ;;  %s1873_s16 = sld [smem:[#allocation5 + $0x4]] }
  0x84   :  { %v3426_v33 = vsub.f32 %v3181_v43, %v4170_v50  ;;  %v397_v36 = vsub.f32 %v3280_v40, %v4085_v18  ;;  %v2453_v42 = vpack.c.bf16 %v517_v41, %v510_v28  ;;  %v404_v43 = vsub.f32 %v3285_v57, %v4086_v23  ;;  %s1877_s0 = sld [smem:[#allocation5 + $0x5]]  ;;  %s1881_s5 = sld [smem:[#allocation5 + $0x6]] }
  0x85   :  { %4171 = vst [vmem:[#allocation37_spill] sm:$0xff] %v3433_v35  ;;  %v4172_v46 = vand.u32 4294901760, %v3295_v31  ;;  %v530_v29 = vsub.f32 %v3300_v2, %v4087_v22  ;;  %v4173_v38 = vand.u32 4294901760, %v3183_v44  ;;  %v4174_v18 = vand.u32 4294901760, %v3196_v49  ;;  %2452 = vmatpush3.bf16.msra.mxu1 %v3433_v35  ;;  %s1885_s17 = sld [smem:[#allocation5 + $0x7]]  ;;  %s2939_s26 = smov [#allocation16]  }
  0x86   :  { %v411_v28 = vsub.f32 %v3335_v4, %v4089_v10  ;;  %v4177_v22 = vand.u32 4294901760, %v3213_v54  ;;  %v4181_v16 = vand.u32 4294901760, %v3228_v60  ;;  %2454 = vmatprep.subr.bf16.mxu1 %v2453_v42  ;;  %v398_v26 = vand.u32 4294901760, %v397_v36  ;;  %s96_s20 = scalar_lea.vmem [#allocation8], %s94_s12  ;;  %s1816_s2 = sshll.u32 %s2939_s26, 4  ;;  %s1817_s2 = int_to_ptr.vmem [resolvable:$true] %s1816_s2 }
  0x87   :  { %v523_v21 = vsub.f32 %v3295_v31, %v4172_v46  ;;  %v3451_v50 = vsub.f32 %v3183_v44, %v4173_v38  ;;  %v3456_v41 = vsub.f32 %v3196_v49, %v4174_v18  ;;  %v4176_v46 = vand.u32 4294901760, %v3340_v3  ;;  %s2894_s27 = scalar_lea.vmem %s1817_s2, 128  ;;  %p2899_p1 = scmp.lt.s32.totalorder %s1817_s2, %s1817_s2 }
  0x88   :  { %v3467_v17 = vsub.f32 %v3213_v54, %v4177_v22  ;;  %v4179_v44 = vand.u32 4294901760, %v3224_v58  ;;  %v4180_v49 = vand.u32 4294901760, %v3226_v59  ;;  %v4183_v54 = vand.u32 4294901760, %v3248_v48  ;;  %v240_v10 = vld [vmem:[#allocation3] sm:$0xff]  ;;  %s117_s21 = scalar_lea.vmem [#allocation8], %s1861_s13  ;;  %s135_s7 = scalar_lea.vmem [#allocation8], %s1865_s14 }
  0x89   :  { %4175 = vst [vmem:[#allocation38_spill] sm:$0xff] %v3456_v41  ;;  %v418_v23 = vsub.f32 %v3340_v3, %v4176_v46  ;;  %v3483_v46 = vsub.f32 %v3228_v60, %v4181_v16  ;;  %v405_v60 = vand.u32 4294901760, %v404_v43  ;;  %v524_v16 = vand.u32 4294901760, %v523_v21  ;;  %s153_s4 = scalar_lea.vmem [#allocation8], %s1869_s15  ;;  %s171_s1 = scalar_lea.vmem [#allocation8], %s1873_s16 }
  0x8a   :  { %4178 = vst [vmem:[#allocation39_spill] sm:$0xff] %v3467_v17  ;;  %v3472_v38 = vsub.f32 %v3224_v58, %v4179_v44  ;;  %v3477_v18 = vsub.f32 %v3226_v59, %v4180_v49  ;;  %v3488_v22 = vsub.f32 %v3248_v48, %v4183_v54  ;;  %v4184_v58 = vand.u32 4294901760, %v3258_v52  ;;  %v241_v49 = vld [vmem:[#allocation3 + $0x8] sm:$0xff]  ;;  %s189_s22 = scalar_lea.vmem [#allocation8], %s1877_s0  ;;  %p2895_p0 = scmp.ne.s32.totalorder %s1817_s2, %s2894_s27 }
  0x8b   :  { %4182 = vst [vmem:[#allocation40_spill] sm:$0xff] %v3483_v46  ;;  %v531_v14 = vand.u32 4294901760, %v530_v29  ;;  %v3497_v6 = vand.u32 4294901760, %v241_v49  ;;  %v3499_v48 = vand.u32 4294901760, %v240_v10  ;;  %v412_v54 = vand.u32 4294901760, %v411_v28  ;;  %s225_s23 = scalar_lea.vmem [#allocation8], %s1885_s17  ;;  %p2900_p2 = scmp.lt.s32.totalorder %s2894_s27, %s2894_s27 }
  0x8c   :  { %v3493_v44 = vsub.f32 %v3258_v52, %v4184_v58  ;;  %v419_v5 = vand.u32 4294901760, %v418_v23  ;;  %v4187_v52 = vand.u32 4294901760, %v3345_v9  ;;  %v4190_v21 = vand.u32 4294901760, %v3350_v0 }
  0x8d   :  { %4185 = vst [vmem:[#allocation41_spill] sm:$0xff] %v3497_v6  ;;  %4186 = vst [vmem:[#allocation42_spill] sm:$0xff] %v3499_v48  ;;  %v3508_v36 = vsub.f32 %v241_v49, %v3497_v6  ;;  %v3511_v43 = vsub.f32 %v240_v10, %v3499_v48  ;;  %v2455_v10 = vpack.c.bf16 %v405_v60, %v398_v26  ;;  %v4192_v29 = vand.u32 4294901760, %v3360_v13  ;;  %p2901_p3 = por %p2900_p2, %p2899_p1 }
  0x8e   :  { %v537_v58 = vsub.f32 %v3345_v9, %v4187_v52  ;;  %v544_v23 = vsub.f32 %v3350_v0, %v4190_v21  ;;  %v2457_v63 = vpack.c.bf16 %v531_v14, %v524_v16  ;;  %v425_v21 = vsub.f32 %v3355_v12, %v4191_v55 }
  0x8f   :  { %4188 = vst [vmem:[#allocation43_spill] sm:$0xff] %v3508_v36  ;;  %4189 = vst [vmem:[#allocation44_spill] sm:$0xff] %v3511_v43  ;;  %v4109_v49 = vand.u32 4294901760, %v3508_v36  ;;  %v4112_v35 = vand.u32 4294901760, %v3511_v43  ;;  %v432_v28 = vsub.f32 %v3360_v13, %v4192_v29  ;;  %v4193_v52 = vand.u32 4294901760, %v3387_v56  ;;  %p2902_p4 = pnand %p2901_p3, %p2895_p0 }
  0x90   :  { %v538_v25 = vand.u32 4294901760, %v537_v58  ;;  %v545_v26 = vand.u32 4294901760, %v544_v23  ;;  %v4194_v60 = vand.u32 4294901760, %v3392_v24  ;;  %v4195_v16 = vand.u32 4294901760, %v3401_v8 }
  0x91   :  { %v551_v59 = vsub.f32 %v3387_v56, %v4193_v52  ;;  %v380_v42 = vsub.f32 %v3508_v36, %v4109_v49  ;;  %v386_v14 = vsub.f32 %v3511_v43, %v4112_v35  ;;  %v4196_v29 = vand.u32 4294901760, %v3406_v37 }
  0x92   :  { %v558_v55 = vsub.f32 %v3392_v24, %v4194_v60  ;;  %v439_v58 = vsub.f32 %v3401_v8, %v4195_v16  ;;  %v4197_v53 = vand.u32 4294901760, %v3411_v1  ;;  %v4198_v45 = vand.u32 4294901760, %v3416_v27 }
  0x93   :  { %v446_v52 = vsub.f32 %v3406_v37, %v4196_v29  ;;  %v381_v35 = vand.u32 4294901760, %v380_v42  ;;  %v387_v39 = vand.u32 4294901760, %v386_v14  ;;  %v2459_v30 = vpack.c.bf16 %v419_v5, %v412_v54 }
  0x94   :  { %v565_v49 = vsub.f32 %v3411_v1, %v4197_v53  ;;  %v572_v23 = vsub.f32 %v3416_v27, %v4198_v45  ;;  %v578_v16 = vand.u32 4294901760, %v3451_v50  ;;  %v585_v20 = vand.u32 4294901760, %v3456_v41 }
  0x95   :  { %v466_v29 = vand.u32 4294901760, %v3467_v17  ;;  %382 = vmatprep.mubr.f32.mxu1 %v381_v35  ;;  %v2461_v19 = vpack.c.bf16 %v545_v26, %v538_v25  ;;  %v426_v53 = vand.u32 4294901760, %v425_v21  ;;  %v433_v43 = vand.u32 4294901760, %v432_v28 }
  0x96   :  { %v552_v15 = vand.u32 4294901760, %v551_v59  ;;  %388 = vmatmul.mubr.f32.vlgmr.msra.gmra.mrb[0].mxu1 %v387_v39  ;;  %v559_v45 = vand.u32 4294901760, %v558_v55  ;;  %v440_v42 = vand.u32 4294901760, %v439_v58  ;;  %v447_v14 = vand.u32 4294901760, %v446_v52 }
  0x97   :  { %v473_v60 = vand.u32 4294901760, %v3472_v38  ;;  %2456 = vmatpush3.bf16.msra.mxu1 %v2455_v10  ;;  %v566_v34 = vand.u32 4294901760, %v565_v49  ;;  %v573_v5 = vand.u32 4294901760, %v572_v23  ;;  %v4199_v54 = vand.u32 4294901760, %v3421_v32  ;;  %618 = vmatprep.mubr.f32.mxu1 %v3497_v6 }
  0x98   :  { %v4200_v48 = vand.u32 4294901760, %v3426_v33  ;;  %2458 = vmatprep.subr.bf16.mxu1 %v2457_v63  ;;  %v579_v35 = vsub.f32 %v3451_v50, %v578_v16  ;;  %v586_v39 = vsub.f32 %v3456_v41, %v585_v20  ;;  %v467_v59 = vsub.f32 %v3467_v17, %v466_v29 }
  0x99   :  { %v453_v36 = vsub.f32 %v3421_v32, %v4199_v54  ;;  %v592_v28 = vand.u32 4294901760, %v3477_v18  ;;  %v4201_v49 = vand.u32 4294901760, %v3270_v51  ;;  %v4202_v21 = vand.u32 4294901760, %v3272_v47 }
  0x9a   :  { %v460_v25 = vsub.f32 %v3426_v33, %v4200_v48  ;;  %v4203_v63 = vand.u32 4294901760, %v3315_v7  ;;  %v4204_v55 = vand.u32 4294901760, %v3321_v11  ;;  %v2463_v52 = vpack.c.bf16 %v433_v43, %v426_v53 }
  0x9b   :  { %v3573_v10 = vsub.f32 %v3270_v51, %v4201_v49  ;;  %v3578_v48 = vsub.f32 %v3272_v47, %v4202_v21  ;;  %v2465_v23 = vpack.c.bf16 %v559_v45, %v552_v15  ;;  %v474_v51 = vsub.f32 %v3472_v38, %v473_v60  ;;  %2460 = vmatpush3.bf16.msra.mxu1 %v2459_v30 }
  0x9c   :  { %v3583_v26 = vsub.f32 %v3315_v7, %v4203_v63  ;;  %v3588_v58 = vsub.f32 %v3321_v11, %v4204_v55  ;;  %v599_v54 = vand.u32 4294901760, %v3483_v46  ;;  %v2467_v49 = vpack.c.bf16 %v447_v14, %v440_v42  ;;  %2462 = vmatprep.subr.bf16.mxu1 %v2461_v19 }
  0x9d   :  { %v2469_v47 = vpack.c.bf16 %v573_v5, %v566_v34  ;;  %v454_v21 = vand.u32 4294901760, %v453_v36  ;;  %v461_v6 = vand.u32 4294901760, %v460_v25  ;;  %v580_v17 = vand.u32 4294901760, %v579_v35 }
  0x9e   :  { %v587_v7 = vand.u32 4294901760, %v586_v39  ;;  %v468_v63 = vand.u32 4294901760, %v467_v59  ;;  %v593_v41 = vsub.f32 %v3477_v18, %v592_v28  ;;  %v480_v11 = vand.u32 4294901760, %v3488_v22 }
  0x9f   :  { %v487_v43 = vand.u32 4294901760, %v3493_v44  ;;  %v606_v15 = vand.u32 4294901760, %v3573_v10  ;;  %v613_v53 = vand.u32 4294901760, %v3578_v48  ;;  %v475_v45 = vand.u32 4294901760, %v474_v51  ;;  %2464 = vmatpush3.bf16.msra.mxu1 %v2463_v52 }
  0xa0   :  { %v600_v30 = vsub.f32 %v3483_v46, %v599_v54  ;;  %v494_v34 = vand.u32 4294901760, %v3583_v26  ;;  %v501_v19 = vand.u32 4294901760, %v3588_v58  ;;  %v4205_v36 = vand.u32 4294901760, %v3234_v61  ;;  %2466 = vmatprep.subr.bf16.mxu1 %v2465_v23 }
  0xa1   :  { %v4206_v42 = vand.u32 4294901760, %v3239_v62  ;;  %v4208_v5 = vand.u32 4294901760, %v3280_v40  ;;  %v4209_v25 = vand.u32 4294901760, %v3285_v57  ;;  %v4211_v39 = vand.u32 4294901760, %v3295_v31 }
  0xa2   :  { %v4212_v59 = vand.u32 4294901760, %v3300_v2  ;;  %v4214_v52 = vand.u32 4294901760, %v3335_v4  ;;  %v4215_v51 = vand.u32 4294901760, %v3340_v3  ;;  %v4225_v23 = vand.u32 4294901760, %v3401_v8 }
  0xa3   :  { %v3604_v14 = vpack.c.bf16 %v4206_v42, %v4205_v36  ;;  %v3610_v35 = vpack.c.bf16 %v4209_v25, %v4208_v5  ;;  %v4216_v36 = vand.u32 4294901760, %v3345_v9  ;;  %v4217_v42 = vand.u32 4294901760, %v3350_v0  ;;  %2468 = vmatpush3.bf16.msra.mxu1 %v2467_v49 }
  0xa4   :  { %v3616_v55 = vpack.c.bf16 %v4212_v59, %v4211_v39  ;;  %v3622_v46 = vpack.c.bf16 %v4215_v51, %v4214_v52  ;;  %v4219_v5 = vand.u32 4294901760, %v3355_v12  ;;  %v4220_v25 = vand.u32 4294901760, %v3360_v13  ;;  %2470 = vmatprep.subr.bf16.mxu1 %v2469_v47 }
  0xa5   :  { %4207 = vst [vmem:[#allocation45_spill] sm:$0xff] %v3604_v14  ;;  %4210 = vst [vmem:[#allocation46_spill] sm:$0xff] %v3610_v35  ;;  %v3628_v14 = vpack.c.bf16 %v4217_v42, %v4216_v36  ;;  %v4222_v39 = vand.u32 4294901760, %v3387_v56  ;;  %v4223_v59 = vand.u32 4294901760, %v3392_v24  ;;  %v4226_v52 = vand.u32 4294901760, %v3406_v37 }
  0xa6   :  { %4213 = vst [vmem:[#allocation47_spill] sm:$0xff] %v3616_v55  ;;  %v3634_v35 = vpack.c.bf16 %v4220_v25, %v4219_v5  ;;  %v4228_v36 = vand.u32 4294901760, %v3411_v1  ;;  %v4229_v42 = vand.u32 4294901760, %v3416_v27  ;;  %v4231_v5 = vand.u32 4294901760, %v3421_v32 }
  0xa7   :  { %4218 = vst [vmem:[#allocation48_spill] sm:$0xff] %v3628_v14  ;;  %v3640_v55 = vpack.c.bf16 %v4223_v59, %v4222_v39  ;;  %v3646_v51 = vpack.c.bf16 %v4226_v52, %v4225_v23  ;;  %v4232_v25 = vand.u32 4294901760, %v3426_v33  ;;  %v3660_v39 = vpack.c.bf16 %v585_v20, %v578_v16 }
  0xa8   :  { %4221 = vst [vmem:[#allocation49_spill] sm:$0xff] %v3634_v35  ;;  %v3652_v14 = vpack.c.bf16 %v4229_v42, %v4228_v36  ;;  %v3662_v59 = vpack.c.bf16 %v473_v60, %v466_v29  ;;  %v3666_v23 = vpack.c.bf16 %v487_v43, %v480_v11  ;;  %v3668_v52 = vpack.c.bf16 %v613_v53, %v606_v15 }
  0xa9   :  { %4224 = vst [vmem:[#allocation50_spill] sm:$0xff] %v3640_v55  ;;  %4227 = vst [vmem:[#allocation51_spill] sm:$0xff] %v3646_v51  ;;  %v3658_v35 = vpack.c.bf16 %v4232_v25, %v4231_v5  ;;  %v3664_v55 = vpack.c.bf16 %v599_v54, %v592_v28  ;;  %v3670_v51 = vpack.c.bf16 %v501_v19, %v494_v34  ;;  %v594_v20 = vand.u32 4294901760, %v593_v41 }
  0xaa   :  { %4230 = vst [vmem:[#allocation52_spill] sm:$0xff] %v3652_v14  ;;  %v2471_v36 = vpack.c.bf16 %v461_v6, %v454_v21  ;;  %v2473_v42 = vpack.c.bf16 %v587_v7, %v580_v17  ;;  %v481_v14 = vsub.f32 %v3488_v22, %v480_v11  ;;  %v488_v5 = vsub.f32 %v3493_v44, %v487_v43 }
  0xab   :  { %4233 = vst [vmem:[#allocation53_spill] sm:$0xff] %v3670_v51  ;;  %v601_v16 = vand.u32 4294901760, %v600_v30  ;;  %v607_v60 = vsub.f32 %v3573_v10, %v606_v15  ;;  %v614_v29 = vsub.f32 %v3578_v48, %v613_v53  ;;  %v2475_v28 = vpack.c.bf16 %v475_v45, %v468_v63  ;;  %v4234_v45 = vld [vmem:[#allocation42_spill] sm:$0xff] }
  0xac   :  { %2472 = vmatpush3.bf16.msra.mxu1 %v2471_v36  ;;  %v482_v54 = vand.u32 4294901760, %v481_v14  ;;  %v489_v25 = vand.u32 4294901760, %v488_v5  ;;  %v495_v51 = vsub.f32 %v3583_v26, %v494_v34  ;;  %v502_v6 = vsub.f32 %v3588_v58, %v501_v19  ;;  %v4235_v34 = vld [vmem:[#allocation43_spill] sm:$0xff]  ;;  %v4253_v19 = vld [vmem:[#allocation34_spill] sm:$0xff]  ;;  %v4256_v36 = vld [vmem:[#allocation37_spill] sm:$0xff] }
  0xad   :  { %2474 = vmatprep.subr.bf16.mxu1 %v2473_v42  ;;  %v2477_v17 = vpack.c.bf16 %v601_v16, %v594_v20  ;;  %v608_v49 = vand.u32 4294901760, %v607_v60  ;;  %v615_v21 = vand.u32 4294901760, %v614_v29  ;;  %v2485_v63 = vpack.c.bf16 %v3239_v62, %v3234_v61  ;;  %v4254_v14 = vld [vmem:[#allocation35_spill] sm:$0xff]  ;;  %v4257_v42 = vld [vmem:[#allocation45_spill] sm:$0xff]  ;;  %v4259_v20 = vld [vmem:[#allocation46_spill] sm:$0xff] }
  0xae   :  { %v2479_v47 = vpack.c.bf16 %v489_v25, %v482_v54  ;;  %v496_v41 = vand.u32 4294901760, %v495_v51  ;;  %v503_v7 = vand.u32 4294901760, %v502_v6  ;;  %v2487_v15 = vpack.c.bf16 %v3285_v57, %v3280_v40  ;;  %v4255_v51 = vld [vmem:[#allocation36_spill] sm:$0xff]  ;;  %v4260_v16 = vld [vmem:[#allocation41_spill] sm:$0xff]  ;;  %v4261_v60 = vld [vmem:[#allocation47_spill] sm:$0xff] }
  0xaf   :  { %v2481_v11 = vpack.c.bf16 %v615_v21, %v608_v49  ;;  %v2489_v53 = vpack.c.bf16 %v3300_v2, %v3295_v31  ;;  %v2491_v30 = vpack.c.bf16 %v3340_v3, %v3335_v4  ;;  %v2493_v61 = vpack.c.bf16 %v3350_v0, %v3345_v9  ;;  %v4236_v4 = vld [vmem:[#allocation38_spill] sm:$0xff]  ;;  %v4237_v2 = vld [vmem:[#allocation39_spill] sm:$0xff]  ;;  %v4238_v9 = vld [vmem:[#allocation40_spill] sm:$0xff] }
  0xb0   :  { %2476 = vmatpush3.bf16.msra.mxu1 %v2475_v28  ;;  %v2483_v43 = vpack.c.bf16 %v503_v7, %v496_v41  ;;  %v2495_v40 = vpack.c.bf16 %v3360_v13, %v3355_v12  ;;  %v2497_v31 = vpack.c.bf16 %v3392_v24, %v3387_v56  ;;  %v2499_v57 = vpack.c.bf16 %v3406_v37, %v3401_v8  ;;  %v4239_v37 = vld [vmem:[#allocation22_spill] sm:$0xff]  ;;  %v4262_v29 = vld [vmem:[#allocation48_spill] sm:$0xff]  ;;  %v4263_v28 = vld [vmem:[#allocation49_spill] sm:$0xff] }
  0xb1   :  { %2478 = vmatprep.subr.bf16.mxu1 %v2477_v17  ;;  %v2501_v62 = vpack.c.bf16 %v3416_v27, %v3411_v1  ;;  %v2503_v3 = vpack.c.bf16 %v3426_v33, %v3421_v32  ;;  %v2505_v0 = vpack.c.bf16 %v4236_v4, %v3451_v50  ;;  %v2507_v56 = vpack.c.bf16 %v3472_v38, %v4237_v2  ;;  %v4240_v1 = vld [vmem:[#allocation44_spill] sm:$0xff]  ;;  %v4241_v27 = vld [vmem:[#allocation23_spill] sm:$0xff]  ;;  %v4244_v50 = vld [vmem:[#allocation25_spill] sm:$0xff] }
  0xb2   :  { %v2509_v8 = vpack.c.bf16 %v4238_v9, %v3477_v18  ;;  %v2511_v12 = vpack.c.bf16 %v3493_v44, %v3488_v22  ;;  %v2513_v13 = vpack.c.bf16 %v3578_v48, %v3573_v10  ;;  %v2515_v24 = vpack.c.bf16 %v3588_v58, %v3583_v26  ;;  %v4243_v33 = vld [vmem:[#allocation24_spill] sm:$0xff]  ;;  %v4245_v38 = vld [vmem:[#allocation26_spill] sm:$0xff]  ;;  %v4246_v18 = vld [vmem:[#allocation27_spill] sm:$0xff] }
  0xb3   :  { %v4242_v32 = vand.u32 4294901760, %v4235_v34  ;;  %v4247_v22 = vld [vmem:[#allocation28_spill] sm:$0xff]  ;;  %v4248_v44 = vld [vmem:[#allocation29_spill] sm:$0xff]  ;;  %v4249_v10 = vld [vmem:[#allocation30_spill] sm:$0xff]  ;;  %v4258_v5 = vand.u32 4294901760, %v4240_v1  ;;  %v2936_v17 = vmov 0.0|0.0  }
  0xb4   :  { %2480 = vmatpush3.bf16.msra.mxu1 %v2479_v47  ;;  %v4250_v48 = vld [vmem:[#allocation31_spill] sm:$0xff]  ;;  %v4251_v26 = vld [vmem:[#allocation32_spill] sm:$0xff]  ;;  %v4252_v58 = vld [vmem:[#allocation33_spill] sm:$0xff]  ;;  %2613 = vmatprep.subr.bf16.mxu0 %v2936_v17  ;;  %vm2937_vm1 = vmmov 0  }
  0xb5   :  { %2482 = vmatprep.subr.bf16.mxu1 %v2481_v11  ;;  %v4264_v54 = vld [vmem:[#allocation50_spill] sm:$0xff]  ;;  %v4265_v25 = vld [vmem:[#allocation51_spill] sm:$0xff]  ;;  %v4266_v6 = vld [vmem:[#allocation52_spill] sm:$0xff] }
  0xb6   :  { %v1148_v47 = vld [vmem:[#allocation14 + $0x18] sm:$0xff]  ;;  %v1149_v7 = vld [vmem:[#allocation14 + $0x20] sm:$0xff]  ;;  %v1150_v11 = vld [vmem:[#allocation14 + $0x28] sm:$0xff] }
  0xb8   :  { %2484 = vmatpush3.bf16.msra.mxu1 %v2483_v43  ;;  %v1178_v43 = vand.u32 4294901760, %v1148_v47 }
  0xb9   :  { %2486 = vmatprep.subr.bf16.mxu1 %v2485_v63  ;;  %v1181_v63 = vand.u32 4294901760, %v1149_v7 }
  0xbb   :  { %620 = vmatmul.mubr.f32.vlgmr.msra.gmra.mrb[2].mxu1 %v4234_v45 }
  0xbc   :  { %2488 = vmatpush3.bf16.msra.mxu1 %v2487_v15  ;;  %755 = vmatprep.mubr.f32.mxu1 %v4235_v34  ;;  %v1184_v15 = vand.u32 4294901760, %v1150_v11 }
  0xbd   :  { %2490 = vmatprep.subr.bf16.mxu1 %v2489_v53  ;;  %v1151_v53 = vld [vmem:[#allocation14 + $0x30] sm:$0xff] }
  0xbe   :  { %v1187_v4 = vand.u32 4294901760, %v1151_v53  ;;  %v3795_v9 = vpack.c.bf16 %v1184_v15, %v1181_v63 }
  0xc0   :  { %2492 = vmatpush3.bf16.msra.mxu1 %v2491_v30  ;;  %v3790_v2 = vsub.f32 %v1151_v53, %v1187_v4 }
  0xc1   :  { %2494 = vmatprep.subr.bf16.mxu1 %v2493_v61 }
  0xc4   :  { %2496 = vmatpush3.bf16.msra.mxu1 %v2495_v40 }
  0xc5   :  { %2498 = vmatprep.subr.bf16.mxu1 %v2497_v31  ;;  %v3780_v31 = vsub.f32 %v1148_v47, %v1178_v43 }
  0xc8   :  { %2500 = vmatpush3.bf16.msra.mxu1 %v2499_v57  ;;  %v3782_v57 = vsub.f32 %v1149_v7, %v1181_v63 }
  0xc9   :  { %2502 = vmatprep.subr.bf16.mxu1 %v2501_v62 }
  0xcc   :  { %2504 = vmatpush3.bf16.msra.mxu1 %v2503_v3  ;;  %v3787_v3 = vsub.f32 %v1150_v11, %v1184_v15  ;;  %v2938_v11 = vmov 0.0  }
  0xcd   :  { %2506 = vmatprep.subr.bf16.mxu1 %v2505_v0  ;;  %2243 = vmatprep.mubr.msk.f32.mxu0 %vm2937_vm1, %v2938_v11 }
  0xd0   :  { %2508 = vmatpush3.bf16.msra.mxu1 %v2507_v56 }
  0xd1   :  { %2510 = vmatprep.subr.bf16.mxu1 %v2509_v8 }
  0xd4   :  { %2512 = vmatpush3.bf16.msra.mxu1 %v2511_v12  ;;  %v1889_v12 = vld [vmem:[%s4060_s6] ss:$0 sm:$0xff]  ;;  %s207_s6 = scalar_lea.vmem [#allocation8], %s1881_s5 }
  0xd5   :  { %2514 = vmatprep.subr.bf16.mxu1 %v2513_v13  ;;  %v97_v13 = vld [vmem:[%s96_s20] sm:$0x1] }
  0xd6   :  { %98 = vst [vmem:[#allocation2] sm:$0x1] %v97_v13 }
  0xd8   :  { %2516 = vmatpush3.bf16.msra.mxu1 %v2515_v24  ;;  %v118_v24 = vld [vmem:[%s117_s21] sm:$0x1] }
  0xd9   :  { %2518 = vmatprep.subr.bf16.mxu1 %v4239_v37  ;;  %119 = vst [vmem:[#allocation2 + $0x1] sm:$0x1] %v118_v24 }
  0xdb   :  { %758 = vmatmul.mubr.f32.vlgmr.msra.gmra.mrb[4].mxu1 %v4240_v1  ;;  %v154_v1 = vld [vmem:[%s153_s4] sm:$0x1] }
  0xdc   :  { %2520 = vmatpush3.bf16.msra.mxu1 %v4241_v27  ;;  %862 = vmatprep.mubr.f32.mxu1 %v4242_v32  ;;  %155 = vst [vmem:[#allocation2 + $0x3] sm:$0x1] %v154_v1  ;;  %v190_v32 = vld [vmem:[%s189_s22] sm:$0x1] }
  0xdd   :  { %2522 = vmatprep.subr.bf16.mxu1 %v4243_v33  ;;  %191 = vst [vmem:[#allocation2 + $0x5] sm:$0x1] %v190_v32  ;;  %v1297_v32 = vand.u32 4294901760, %v3787_v3 }
  0xe0   :  { %2524 = vmatpush3.bf16.msra.mxu1 %v4244_v50 }
  0xe1   :  { %2526 = vmatprep.subr.bf16.mxu1 %v4245_v38 }
  0xe4   :  { %2528 = vmatpush3.bf16.msra.mxu1 %v4246_v18 }
  0xe5   :  { %2530 = vmatprep.subr.bf16.mxu1 %v4247_v22 }
  0xe8   :  { %2532 = vmatpush3.bf16.msra.mxu1 %v4248_v44 }
  0xe9   :  { %2534 = vmatprep.subr.bf16.mxu1 %v4249_v10 }
  0xec   :  { %2536 = vmatpush3.bf16.msra.mxu1 %v4250_v48 }
  0xed   :  { %2538 = vmatprep.subr.bf16.mxu1 %v4251_v26 }
  0xf0   :  { %2540 = vmatpush3.bf16.msra.mxu1 %v4252_v58 }
  0xf1   :  { %2542 = vmatprep.subr.bf16.mxu1 %v4253_v19 }
  0xf4   :  { %2544 = vmatpush3.bf16.msra.mxu1 %v4254_v14 }
  0xf5   :  { %2546 = vmatprep.subr.bf16.mxu1 %v4255_v51 }
  0xf8   :  { %2548 = vmatpush3.bf16.msra.mxu1 %v4256_v36 }
  0xf9   :  { %2550 = vmatprep.subr.bf16.mxu1 %v4257_v42 }
  0xfb   :  { %866 = vmatmul.mubr.f32.vlgmr.msra.gmra.mrb[6].mxu1 %v4258_v5 }
  0xfc   :  { %2552 = vmatpush3.bf16.msra.mxu1 %v4259_v20  ;;  %1032 = vmatprep.mubr.f32.mxu1 %v4260_v16  ;;  %v1157_v20 = vld [vmem:[#allocation14 + $0x60] sm:$0xff] }
  0xfd   :  { %2554 = vmatprep.subr.bf16.mxu1 %v4261_v60 }
 0x100   :  { %2556 = vmatpush3.bf16.msra.mxu1 %v3622_v46  ;;  %v4267_v46 = vld [vmem:[#allocation53_spill] sm:$0xff] }
 0x101   :  { %2558 = vmatprep.subr.bf16.mxu1 %v4262_v29  ;;  %v1205_v29 = vand.u32 4294901760, %v1157_v20 }
 0x104   :  { %2560 = vmatpush3.bf16.msra.mxu1 %v4263_v28 }
 0x105   :  { %2562 = vmatprep.subr.bf16.mxu1 %v4264_v54 }
 0x108   :  { %2564 = vmatpush3.bf16.msra.mxu1 %v4265_v25  ;;  %v1159_v25 = vld [vmem:[#allocation14 + $0x70] sm:$0xff] }
 0x109   :  { %2566 = vmatprep.subr.bf16.mxu1 %v4266_v6  ;;  %v1160_v6 = vld [vmem:[#allocation14 + $0x78] sm:$0xff] }
 0x10c   :  { %2568 = vmatpush3.bf16.msra.mxu1 %v3658_v35 }
 0x10d   :  { %2570 = vmatprep.subr.bf16.mxu1 %v3660_v39 }
 0x110   :  { %2572 = vmatpush3.bf16.msra.mxu1 %v3662_v59  ;;  %v1145_v59 = vld [vmem:[#allocation14] sm:$0xff] }
 0x111   :  { %2574 = vmatprep.subr.bf16.mxu1 %v3664_v55  ;;  %v1169_v49 = vand.u32 4294901760, %v1145_v59 }
 0x113   :  { %v3774_v34 = vsub.f32 %v1145_v59, %v1169_v49  ;;  %v3828_v59 = vsub.f32 %v1157_v20, %v1205_v29 }
 0x114   :  { %2576 = vmatpush3.bf16.msra.mxu1 %v3666_v23  ;;  %v1146_v23 = vld [vmem:[#allocation14 + $0x8] sm:$0xff] }
 0x115   :  { %2578 = vmatprep.subr.bf16.mxu1 %v3668_v52  ;;  %v1147_v52 = vld [vmem:[#allocation14 + $0x10] sm:$0xff]  ;;  %v1172_v21 = vand.u32 4294901760, %v1146_v23 }
 0x116   :  { %v1175_v41 = vand.u32 4294901760, %v1147_v52 }
 0x117   :  { %v3772_v30 = vpack.c.bf16 %v1172_v21, %v1169_v49  ;;  %v3776_v61 = vsub.f32 %v1146_v23, %v1172_v21  ;;  %v1214_v49 = vand.u32 4294901760, %v1160_v6  ;;  %v1262_v21 = vand.u32 4294901760, %v3774_v34 }
 0x118   :  { %2580 = vmatpush3.bf16.msra.mxu1 %v4267_v46  ;;  %v3778_v40 = vsub.f32 %v1147_v52, %v1175_v41  ;;  %v3785_v62 = vpack.c.bf16 %v1178_v43, %v1175_v41  ;;  %v1211_v52 = vand.u32 4294901760, %v1159_v25 }
 0x119   :  { %2582 = vmatprep.subr.bf16.mxu1 %v4239_v37  ;;  %2615 = vmatpush3.bf16.msra.mxu0 %v3772_v30  ;;  %v136_v37 = vld [vmem:[%s135_s7] sm:$0x1]  ;;  %v1269_v47 = vand.u32 4294901760, %v3776_v61  ;;  %v3836_v7 = vsub.f32 %v1160_v6, %v1214_v49  ;;  %v1263_v63 = vsub.f32 %v3774_v34, %v1262_v21 }
 0x11a   :  { %2616 = vmatprep.subr.bf16.mxu0 %v2936_v17  ;;  %137 = vst [vmem:[#allocation2 + $0x2] sm:$0x1] %v136_v37  ;;  %v3834_v41 = vsub.f32 %v1159_v25, %v1211_v52  ;;  %v3841_v43 = vpack.c.bf16 %v1214_v49, %v1211_v52  ;;  %v1276_v53 = vand.u32 4294901760, %v3778_v40 }
 0x11b   :  { %1034 = vmatmul.mubr.f32.vlgmr.msra.gmra.mrb[8].mxu1 %v4234_v45  ;;  %v1270_v15 = vsub.f32 %v3776_v61, %v1269_v47 }
 0x11c   :  { %2584 = vmatpush3.bf16.msra.mxu1 %v4241_v27  ;;  %1136 = vmatprep.mubr.f32.mxu1 %v4260_v16  ;;  %v172_v27 = vld [vmem:[%s171_s1] sm:$0x1] }
 0x11d   :  { %2586 = vmatprep.subr.bf16.mxu1 %v4243_v33  ;;  %2618 = vmatpush3.bf16.msra.mxu0 %v3785_v62  ;;  %173 = vst [vmem:[#allocation2 + $0x4] sm:$0x1] %v172_v27  ;;  %v1158_v16 = vld [vmem:[#allocation14 + $0x68] sm:$0xff]  ;;  %v1290_v27 = vand.u32 4294901760, %v3782_v57 }
 0x11e   :  { %2619 = vmatprep.subr.bf16.mxu0 %v2936_v17  ;;  %v1208_v28 = vand.u32 4294901760, %v1158_v16 }
 0x120   :  { %2588 = vmatpush3.bf16.msra.mxu1 %v4244_v50  ;;  %v208_v50 = vld [vmem:[%s207_s6] sm:$0x1]  ;;  %v3816_v54 = vpack.c.bf16 %v1208_v28, %v1205_v29  ;;  %v3830_v23 = vsub.f32 %v1158_v16, %v1208_v28 }
 0x121   :  { %2590 = vmatprep.subr.bf16.mxu1 %v4245_v38  ;;  %2621 = vmatpush3.bf16.msra.mxu0 %v3795_v9  ;;  %v226_v38 = vld [vmem:[%s225_s23] sm:$0x1]  ;;  %209 = vst [vmem:[#allocation2 + $0x6] sm:$0x1] %v208_v50  ;;  %v1291_v50 = vsub.f32 %v3782_v57, %v1290_v27 }
 0x122   :  { %2622 = vmatprep.subr.bf16.mxu0 %v2936_v17  ;;  %227 = vst [vmem:[#allocation2 + $0x7] sm:$0x1] %v226_v38  ;;  %v1298_v38 = vsub.f32 %v3787_v3, %v1297_v32 }
 0x124   :  { %2592 = vmatpush3.bf16.msra.mxu1 %v4246_v18  ;;  %v1153_v18 = vld [vmem:[#allocation14 + $0x40] sm:$0xff] }
 0x125   :  { %2594 = vmatprep.subr.bf16.mxu1 %v4247_v22 }
 0x128   :  { %2596 = vmatpush3.bf16.msra.mxu1 %v4248_v44 }
 0x129   :  { %2598 = vmatprep.subr.bf16.mxu1 %v4249_v10  ;;  %v1154_v10 = vld [vmem:[#allocation14 + $0x48] sm:$0xff] }
 0x12c   :  { %2600 = vmatpush3.bf16.msra.mxu1 %v4250_v48  ;;  %v1193_v48 = vand.u32 4294901760, %v1153_v18 }
 0x12d   :  { %2602 = vmatprep.subr.bf16.mxu1 %v4251_v26  ;;  %v1155_v26 = vld [vmem:[#allocation14 + $0x50] sm:$0xff] }
 0x12e   :  { %v3818_v46 = vsub.f32 %v1153_v18, %v1193_v48  ;;  %v1292_v18 = vand.u32 4294901760, %v1291_v50  ;;  %v4138_v50 = vand.u32 4294901760, %v3830_v23 }
 0x130   :  { %2604 = vmatpush3.bf16.msra.mxu1 %v4252_v58  ;;  %v1156_v58 = vld [vmem:[#allocation14 + $0x58] sm:$0xff] }
 0x131   :  { %2606 = vmatprep.subr.bf16.mxu1 %v4253_v19 }
 0x134   :  { %2608 = vmatpush3.bf16.msra.mxu1 %v4254_v14  ;;  %v1196_v14 = vand.u32 4294901760, %v1154_v10 }
 0x135   :  { %2610 = vmatprep.subr.bf16.mxu1 %v4255_v51  ;;  %v1199_v51 = vand.u32 4294901760, %v1155_v26 }
 0x136   :  { %v3810_v5 = vpack.c.bf16 %v1196_v14, %v1193_v48 }
 0x138   :  { %2612 = vmatpush3.bf16.msra.mxu1 %v4256_v36  ;;  %v1202_v36 = vand.u32 4294901760, %v1156_v58 }
 0x13a   :  { %v3813_v60 = vpack.c.bf16 %v1202_v36, %v1199_v51 }
 0x13b   :  { %1138 = vmatmul.mubr.f32.vlgmr.msra.gmra.mrb[10].mxu1 %v4234_v45  ;;  %v1152_v45 = vld [vmem:[#allocation14 + $0x38] sm:$0xff] }
 0x13c   :  { %v1190_v0 = vand.u32 4294901760, %v1152_v45 }
 0x13e   :  { %v3792_v56 = vsub.f32 %v1152_v45, %v1190_v0  ;;  %v3799_v8 = vpack.c.bf16 %v1190_v0, %v1187_v4  ;;  %v1283_v45 = vand.u32 4294901760, %v3780_v31  ;;  %v1264_v4 = vand.u32 4294901760, %v1263_v63 }
 0x13f   :  { %v1271_v0 = vand.u32 4294901760, %v1270_v15 }
 0x140   :  { %2624 = vmatpush3.bf16.msra.mxu0 %v3799_v8  ;;  %v1284_v13 = vsub.f32 %v3780_v31, %v1283_v45 }
 0x141   :  { %2625 = vmatprep.subr.bf16.mxu0 %v2936_v17  ;;  %v3859_v24 = vpack.c.bf16 %v1271_v0, %v1264_v4 }
 0x142   :  { %v1285_v1 = vand.u32 4294901760, %v1284_v13 }
 0x144   :  { %2627 = vmatpush3.bf16.msra.mxu0 %v3810_v5 }
 0x145   :  { %2628 = vmatprep.subr.bf16.mxu0 %v2936_v17 }
 0x148   :  { %2630 = vmatpush3.bf16.msra.mxu0 %v3813_v60 }
 0x149   :  { %2631 = vmatprep.subr.bf16.mxu0 %v2936_v17 }
 0x14c   :  { %2633 = vmatpush3.bf16.msra.mxu0 %v3816_v54 }
 0x14d   :  { %2634 = vmatprep.subr.bf16.mxu0 %v2936_v17 }
 0x150   :  { %2636 = vmatpush3.bf16.msra.mxu0 %v3841_v43 }
 0x151   :  { %2637 = vmatprep.subr.bf16.mxu0 %v2936_v17 }
 0x169   :  { %v1931_v35 = vpop.f32.mrb[0].mxu1 }
 0x16a   :  { %v1932_v55 = vpop.f32.mrb[1].mxu1 }
 0x16b   :  { %v3769_v39 = vadd.f32 %v1932_v55, %v1931_v35  ;;  %v3820_v35 = vsub.f32 %v1154_v10, %v1196_v14  ;;  %v3823_v55 = vsub.f32 %v1155_v26, %v1199_v51  ;;  %v4144_v10 = vand.u32 4294901760, %v3792_v56 }
 0x16c   :  { %v4143_v51 = vand.u32 4294901760, %v3818_v46 }
 0x16d   :  { %v390_v22 = vadd.f32 %v3769_v39, %v1889_v12  ;;  %v3825_v39 = vsub.f32 %v1156_v58, %v1202_v36  ;;  %v1277_v12 = vsub.f32 %v3778_v40, %v1276_v53  ;;  %v1312_v58 = vsub.f32 %v3792_v56, %v4144_v10 }
 0x16e   :  { %v4142_v36 = vand.u32 4294901760, %v3820_v35  ;;  %v1319_v16 = vsub.f32 %v3818_v46, %v4143_v51  ;;  %v4141_v6 = vand.u32 4294901760, %v3823_v55 }
 0x16f   :  { %v1278_v37 = vand.u32 4294901760, %v1277_v12  ;;  %v1313_v14 = vand.u32 4294901760, %v1312_v58  ;;  %v4140_v52 = vand.u32 4294901760, %v3825_v39 }
 0x170   :  { %v1326_v29 = vsub.f32 %v3820_v35, %v4142_v36  ;;  %v1320_v28 = vand.u32 4294901760, %v1319_v16  ;;  %v1333_v4 = vsub.f32 %v3823_v55, %v4141_v6  ;;  %v4136_v16 = vand.u32 4294901760, %v3836_v7  ;;  %v1143_v36 = vld [vmem:[#allocation2] sm:$0xff] }
 0x171   :  { %v1340_v0 = vsub.f32 %v3825_v39, %v4140_v52 }
 0x172   :  { %v1327_v25 = vand.u32 4294901760, %v1326_v29  ;;  %v1334_v13 = vand.u32 4294901760, %v1333_v4  ;;  %v2662_v4 = vpack.c.bf16 %v3776_v61, %v3774_v34  ;;  %v2716_v34 = vpack.c.bf16 %v1297_v32, %v1290_v27 }
 0x173   :  { %v4268_v61 = vand.u32 4294901760, %v3790_v2 }
 0x174   :  { %v2650_v15 = vpack.c.bf16 %v1327_v25, %v1320_v28  ;;  %v1368_v28 = vsub.f32 %v3836_v7, %v4136_v16 }
 0x18e   :  { %v1966_v33 = vpop.f32.mrb[2].mxu1 }
 0x18f   :  { %v1967_v44 = vpop.f32.mrb[3].mxu1 }
 0x190   :  { %v1968_v19 = vadd.f32 %v1967_v44, %v1966_v33  ;;  %v3864_v33 = vpack.c.bf16 %v1285_v1, %v1278_v37  ;;  %v4145_v44 = vand.u32 4294901760, %v3790_v2  ;;  %v1341_v37 = vand.u32 4294901760, %v1340_v0 }
 0x191   :  { %v4139_v1 = vand.u32 4294901760, %v3828_v59  ;;  %v2665_v0 = vpack.c.bf16 %v3780_v31, %v3778_v40  ;;  %v4269_v40 = vand.u32 4294901760, %v3792_v56 }
 0x192   :  { %v3808_v42 = vadd.f32 %v1968_v19, %v390_v22  ;;  %v1299_v22 = vand.u32 4294901760, %v1298_v38  ;;  %v1305_v26 = vsub.f32 %v3790_v2, %v4145_v44 }
 0x193   :  { %v2719_v31 = vpack.c.bf16 %v4269_v40, %v4268_v61 }
 0x194   :  { %v3874_v48 = vpack.c.bf16 %v1299_v22, %v1292_v18  ;;  %v1306_v19 = vand.u32 4294901760, %v1305_v26  ;;  %v2653_v18 = vpack.c.bf16 %v1341_v37, %v1334_v13  ;;  %v1347_v22 = vsub.f32 %v3828_v59, %v4139_v1 }
 0x195   :  { %v1354_v26 = vsub.f32 %v3830_v23, %v4138_v50  ;;  %v2671_v13 = vpack.c.bf16 %v3792_v56, %v3790_v2  ;;  %v4274_v2 = vand.u32 4294901760, %v3828_v59  ;;  %v4275_v56 = vand.u32 4294901760, %v3830_v23 }
 0x196   :  { %v3884_v20 = vpack.c.bf16 %v1313_v14, %v1306_v19  ;;  %v1348_v58 = vand.u32 4294901760, %v1347_v22  ;;  %v4137_v14 = vand.u32 4294901760, %v3834_v41  ;;  %v2674_v22 = vpack.c.bf16 %v3820_v35, %v3818_v46 }
 0x197   :  { %v1355_v19 = vand.u32 4294901760, %v1354_v26  ;;  %v2728_v27 = vpack.c.bf16 %v4275_v56, %v4274_v2 }
 0x199   :  { %v2656_v29 = vpack.c.bf16 %v1355_v19, %v1348_v58 }
 0x1ae   :  { %v2001_v49 = vpop.f32.mrb[4].mxu1 }
 0x1af   :  { %v2002_v63 = vpop.f32.mrb[5].mxu1 }
 0x1b0   :  { %v2003_v12 = vadd.f32 %v2002_v63, %v2001_v49  ;;  %v1369_v49 = vand.u32 4294901760, %v1368_v28  ;;  %v2680_v28 = vpack.c.bf16 %v3830_v23, %v3828_v59 }
 0x1b2   :  { %v760_v38 = vadd.f32 %v2003_v12, %v3808_v42  ;;  %v1361_v42 = vsub.f32 %v3834_v41, %v4137_v14  ;;  %v2668_v12 = vpack.c.bf16 %v3787_v3, %v3782_v57  ;;  %v4272_v57 = vand.u32 4294901760, %v3823_v55 }
 0x1b3   :  { %v4273_v3 = vand.u32 4294901760, %v3825_v39 }
 0x1b4   :  { %v1362_v25 = vand.u32 4294901760, %v1361_v42  ;;  %v2677_v42 = vpack.c.bf16 %v3825_v39, %v3823_v55 }
 0x1b6   :  { %v2659_v63 = vpack.c.bf16 %v1369_v49, %v1362_v25  ;;  %v2683_v25 = vpack.c.bf16 %v3836_v7, %v3834_v41 }
 0x1ce   :  { %v2036_v37 = vpop.f32.mrb[6].mxu1 }
 0x1cf   :  { %v2037_v26 = vpop.f32.mrb[7].mxu1 }
 0x1d0   :  { %v2038_v58 = vadd.f32 %v2037_v26, %v2036_v37 }
 0x1d2   :  { %v868_v19 = vadd.f32 %v2038_v58, %v760_v38 }
 0x1ee   :  { %v2071_v49 = vpop.f32.mrb[8].mxu1 }
 0x1ef   :  { %v2072_v16 = vpop.f32.mrb[9].mxu1 }
 0x1f0   :  { %v2073_v14 = vadd.f32 %v2072_v16, %v2071_v49 }
 0x1f2   :  { %v1036_v50 = vadd.f32 %v2073_v14, %v868_v19 }
 0x20e   :  { %v2106_v1 = vpop.f32.mrb[10].mxu1 }
 0x20f   :  { %v2107_v52 = vpop.f32.mrb[11].mxu1 }
 0x210   :  { %v2108_v6 = vadd.f32 %v2107_v52, %v2106_v1 }
 0x212   :  { %v1140_v51 = vadd.f32 %v2108_v6, %v1036_v50 }
 0x214   :  { %v1144_v37 = vmul.f32 %v1143_v36, %v1140_v51 }
 0x216   :  { %v3933_v38 = vand.u32 4294901760, %v1144_v37 }
 0x218   :  { %v1250_v26 = vsub.f32 %v1144_v37, %v3933_v38 }
 0x21a   :  { %v1251_v58 = vand.u32 4294901760, %v1250_v26 }
 0x21c   :  { %v1252_v10 = vsub.f32 %v1250_v26, %v1251_v58 }
 0x21e   :  { %v1253_v44 = vand.u32 4294901760, %v1252_v10 }
 0x220   :  { %2244 = vmatmul.mubr.f32.vlgmr.msra.gmra.mrb[0].mxu0 %v1253_v44 }
 0x221   :  { %2639 = vmatpush3.bf16.msra.mxu0 %v3859_v24  ;;  %2278 = vmatprep.mubr.msk.f32.mxu0 %vm2937_vm1, %v2938_v11  ;;  %v2710_v24 = vpack.c.bf16 %v1269_v47, %v1262_v21  ;;  %v4270_v21 = vand.u32 4294901760, %v3818_v46  ;;  %v4271_v47 = vand.u32 4294901760, %v3820_v35  ;;  %v4276_v46 = vand.u32 4294901760, %v3834_v41 }
 0x222   :  { %2640 = vmatprep.subr.bf16.mxu0 %v2936_v17  ;;  %v4277_v35 = vand.u32 4294901760, %v3836_v7 }
 0x224   :  { %v2731_v32 = vpack.c.bf16 %v4277_v35, %v4276_v46 }
 0x225   :  { %2642 = vmatpush3.bf16.msra.mxu0 %v3864_v33  ;;  %v2713_v33 = vpack.c.bf16 %v1283_v45, %v1276_v53  ;;  %v2722_v53 = vpack.c.bf16 %v4271_v47, %v4270_v21  ;;  %v2725_v45 = vpack.c.bf16 %v4273_v3, %v4272_v57 }
 0x226   :  { %2643 = vmatprep.subr.bf16.mxu0 %v2936_v17 }
 0x229   :  { %2645 = vmatpush3.bf16.msra.mxu0 %v3874_v48 }
 0x22a   :  { %2646 = vmatprep.subr.bf16.mxu0 %v2936_v17 }
 0x22d   :  { %2648 = vmatpush3.bf16.msra.mxu0 %v3884_v20 }
 0x22e   :  { %2649 = vmatprep.subr.bf16.mxu0 %v2936_v17 }
 0x231   :  { %2651 = vmatpush3.bf16.msra.mxu0 %v2650_v15 }
 0x232   :  { %2652 = vmatprep.subr.bf16.mxu0 %v2936_v17 }
 0x235   :  { %2654 = vmatpush3.bf16.msra.mxu0 %v2653_v18 }
 0x236   :  { %2655 = vmatprep.subr.bf16.mxu0 %v2936_v17 }
 0x239   :  { %2657 = vmatpush3.bf16.msra.mxu0 %v2656_v29 }
 0x23a   :  { %2658 = vmatprep.subr.bf16.mxu0 %v2936_v17 }
 0x23d   :  { %2660 = vmatpush3.bf16.msra.mxu0 %v2659_v63 }
 0x23e   :  { %2661 = vmatprep.subr.bf16.mxu0 %v2936_v17 }
 0x240   :  { %2279 = vmatmul.mubr.f32.vlgmr.msra.gmra.mrb[0].mxu0 %v3933_v38 }
 0x241   :  { %2663 = vmatpush3.bf16.msra.mxu0 %v2662_v4  ;;  %2313 = vmatprep.mubr.msk.f32.mxu0 %vm2937_vm1, %v2938_v11 }
 0x242   :  { %2664 = vmatprep.subr.bf16.mxu0 %v2936_v17 }
 0x245   :  { %2666 = vmatpush3.bf16.msra.mxu0 %v2665_v0 }
 0x246   :  { %2667 = vmatprep.subr.bf16.mxu0 %v2936_v17 }
 0x249   :  { %2669 = vmatpush3.bf16.msra.mxu0 %v2668_v12 }
 0x24a   :  { %2670 = vmatprep.subr.bf16.mxu0 %v2936_v17 }
 0x24d   :  { %2672 = vmatpush3.bf16.msra.mxu0 %v2671_v13 }
 0x24e   :  { %2673 = vmatprep.subr.bf16.mxu0 %v2936_v17 }
 0x251   :  { %2675 = vmatpush3.bf16.msra.mxu0 %v2674_v22 }
 0x252   :  { %2676 = vmatprep.subr.bf16.mxu0 %v2936_v17 }
 0x255   :  { %2678 = vmatpush3.bf16.msra.mxu0 %v2677_v42 }
 0x256   :  { %2679 = vmatprep.subr.bf16.mxu0 %v2936_v17 }
 0x259   :  { %2681 = vmatpush3.bf16.msra.mxu0 %v2680_v28 }
 0x25a   :  { %2682 = vmatprep.subr.bf16.mxu0 %v2936_v17 }
 0x25d   :  { %2684 = vmatpush3.bf16.msra.mxu0 %v2683_v25 }
 0x25e   :  { %2685 = vmatprep.subr.bf16.mxu0 %v2936_v17 }
 0x260   :  { %2314 = vmatmul.mubr.f32.vlgmr.msra.gmra.mrb[0].mxu0 %v1250_v26 }
 0x261   :  { %2687 = vmatpush3.bf16.msra.mxu0 %v3772_v30  ;;  %2348 = vmatprep.mubr.msk.f32.mxu0 %vm2937_vm1, %v2938_v11 }
 0x262   :  { %2688 = vmatprep.subr.bf16.mxu0 %v2936_v17 }
 0x265   :  { %2690 = vmatpush3.bf16.msra.mxu0 %v3785_v62 }
 0x266   :  { %2691 = vmatprep.subr.bf16.mxu0 %v2936_v17 }
 0x269   :  { %2693 = vmatpush3.bf16.msra.mxu0 %v3795_v9 }
 0x26a   :  { %2694 = vmatprep.subr.bf16.mxu0 %v2936_v17 }
 0x26d   :  { %2696 = vmatpush3.bf16.msra.mxu0 %v3799_v8 }
 0x26e   :  { %2697 = vmatprep.subr.bf16.mxu0 %v2936_v17 }
 0x271   :  { %2699 = vmatpush3.bf16.msra.mxu0 %v3810_v5 }
 0x272   :  { %2700 = vmatprep.subr.bf16.mxu0 %v2936_v17 }
 0x275   :  { %2702 = vmatpush3.bf16.msra.mxu0 %v3813_v60 }
 0x276   :  { %2703 = vmatprep.subr.bf16.mxu0 %v2936_v17 }
 0x279   :  { %2705 = vmatpush3.bf16.msra.mxu0 %v3816_v54 }
 0x27a   :  { %2706 = vmatprep.subr.bf16.mxu0 %v2936_v17 }
 0x27d   :  { %2708 = vmatpush3.bf16.msra.mxu0 %v3841_v43 }
 0x27e   :  { %2709 = vmatprep.subr.bf16.mxu0 %v2936_v17 }
 0x280   :  { %2349 = vmatmul.mubr.f32.vlgmr.msra.gmra.mrb[0].mxu0 %v1251_v58 }
 0x281   :  { %2711 = vmatpush3.bf16.msra.mxu0 %v2710_v24  ;;  %2383 = vmatprep.mubr.msk.f32.mxu0 %vm2937_vm1, %v2938_v11 }
 0x282   :  { %2712 = vmatprep.subr.bf16.mxu0 %v2936_v17 }
 0x285   :  { %2714 = vmatpush3.bf16.msra.mxu0 %v2713_v33 }
 0x286   :  { %2715 = vmatprep.subr.bf16.mxu0 %v2936_v17 }
 0x289   :  { %2717 = vmatpush3.bf16.msra.mxu0 %v2716_v34 }
 0x28a   :  { %2718 = vmatprep.subr.bf16.mxu0 %v2936_v17 }
 0x28d   :  { %2720 = vmatpush3.bf16.msra.mxu0 %v2719_v31 }
 0x28e   :  { %2721 = vmatprep.subr.bf16.mxu0 %v2936_v17 }
 0x291   :  { %2723 = vmatpush3.bf16.msra.mxu0 %v2722_v53 }
 0x292   :  { %2724 = vmatprep.subr.bf16.mxu0 %v2936_v17 }
 0x295   :  { %2726 = vmatpush3.bf16.msra.mxu0 %v2725_v45 }
 0x296   :  { %2727 = vmatprep.subr.bf16.mxu0 %v2936_v17 }
 0x299   :  { %2729 = vmatpush3.bf16.msra.mxu0 %v2728_v27 }
 0x29a   :  { %2730 = vmatprep.subr.bf16.mxu0 %v2936_v17 }
 0x29d   :  { %2732 = vmatpush3.bf16.msra.mxu0 %v2731_v32 }
 0x29e   :  { %2733 = vmatprep.subr.bf16.mxu0 %v2936_v17 }
 0x2a0   :  { %2384 = vmatmul.mubr.f32.vlgmr.msra.gmra.mrb[0].mxu0 %v3933_v38 }
 0x2a1   :  { %2735 = vmatpush3.bf16.msra.mxu0 %v3772_v30  ;;  %2418 = vmatprep.mubr.msk.f32.mxu0 %vm2937_vm1, %v2938_v11  ;;  %v1890_v30 = vld [vmem:[%s4062_s8] ss:$0 sm:$0xff] }
 0x2a2   :  { %2736 = vmatprep.subr.bf16.mxu0 %v2936_v17 }
 0x2a5   :  { %2738 = vmatpush3.bf16.msra.mxu0 %v3785_v62 }
 0x2a6   :  { %2739 = vmatprep.subr.bf16.mxu0 %v2936_v17 }
 0x2a9   :  { %2741 = vmatpush3.bf16.msra.mxu0 %v3795_v9 }
 0x2aa   :  { %2742 = vmatprep.subr.bf16.mxu0 %v2936_v17 }
 0x2ad   :  { %2744 = vmatpush3.bf16.msra.mxu0 %v3799_v8 }
 0x2ae   :  { %2745 = vmatprep.subr.bf16.mxu0 %v2936_v17 }
 0x2b1   :  { %2747 = vmatpush3.bf16.msra.mxu0 %v3810_v5 }
 0x2b2   :  { %2748 = vmatprep.subr.bf16.mxu0 %v2936_v17 }
 0x2b5   :  { %2750 = vmatpush3.bf16.msra.mxu0 %v3813_v60 }
 0x2b6   :  { %2751 = vmatprep.subr.bf16.mxu0 %v2936_v17 }
 0x2b9   :  { %2753 = vmatpush3.bf16.msra.mxu0 %v3816_v54 }
 0x2ba   :  { %2754 = vmatprep.subr.bf16.mxu0 %v2936_v17 }
 0x2bd   :  { %2756 = vmatpush3.bf16.msra.mxu0 %v3841_v43 }
 0x2c0   :  { %2419 = vmatmul.mubr.f32.vlgmr.msra.gmra.mrb[0].mxu0 %v3933_v38 }
 0x393   :  { %v1805_v62 = vpop.f32.mrb[0].mxu0 }
 0x394   :  { %v2757_v9 = vadd.f32 %v1890_v30, %v1805_v62  ;;  %v2420_v8 = vpop.f32.mrb[1].mxu0 }
 0x396   :  { %1809 = vst [vmem:[#allocation16] sm:$0xff] %v2757_v9 }
 0x397   :  { %2905 = shalt.err (!%p2902_p4)
}
 0x398   :  { %s2906_s28 = scalar_lea.hbm %s4063_s9, 128 }
 0x399   :  { %p2907_p5 = scmp.ne.s32.totalorder %s4063_s9, %s2906_s28  ;;  %p2910_p6 = scmp.lt.u32.totalorder %s2906_s28, %s4063_s9 }
 0x39b   :  { %p2912_p7 = pnand %p2910_p6, %p2907_p5 }
 0x39d   :  { %2915 = shalt.err (!%p2912_p7)
}
 0x39e   :  { %1819 = dma.vmem_to_hbm [thread:$0]  %s1817_s2, 128, %s4063_s9, [#allocation10]  }
 0x39f   :  { %2924 = dma.done.wait [#allocation10], 128  }
 0x3a0   :  { %2925 = vsyncadd [#allocation10], 4294967168 }
 0x3a1   :  { %1823 = vsyncpa [#allocation9], 1 }
 0x3a2   :  { %1824 = vsyncpa [#allocation12], 1 }
 0x3a3   :  { %1825 = vsyncpa [#allocation15], 1 }
 0x3a4   :  { %1826 = vsyncpa [#allocation10], 1 }

</bundles_post_ra>
